<compile_context>
chip_gen: v5e
topology: v5e:2x2
jax: 0.10.0
libtpu: 0.0.40
codegen_flags: <defaults>
</compile_context>

<pallas_src>
import functools

import jax
import jax.numpy as jnp
from jax.experimental import pallas as pl
from jax.experimental.pallas import tpu as pltpu

MODEL_NAMES = [
    "dino-vitb8",
    "convnextv2-tiny-1k-224",
    "swin-tiny-patch4-window7-224",
]


def _round_up(v, m):
    return (v + m - 1) // m * m


# ---------------------------------------------------------------------------
# Fused kernel:  grid = (KT, E)  -- K (contraction over Dimg) outer, expert
# inner (so the image K-tile is fetched once and revisited across experts).
# Routing epilogue runs on the very last grid step.
# ---------------------------------------------------------------------------
def fused_encoder_kernel(x_ref, bw_ref, pw_ref, temp_ref,
                         stacked_ref, combined_ref, probs_ref, idx_ref,
                         w_ref, sims_ref, acc_ref, *, num_experts, top_k):
    # x_ref       : (Bp, tk)          bf16  image K-tile (resident across inner E loop)
    # bw_ref      : (1, tk, Dfp)      bf16  this expert's backbone K-tile
    # pw_ref      : (E, Dfp, Hdp)     bf16  ALL projectors (small, fully resident)
    # temp_ref    : (1,)              f32   temperature (SMEM)
    # stacked_ref : (E, Bp, Hdp)      f32   resident output: normalized expert feats
    # combined/probs/idx/w/sims       :     routing outputs, written on last step only
    # acc_ref     : (E, Bp, Dfp)      f32   per-expert backbone accumulators (VMEM scratch)
    kk = pl.program_id(0)
    e = pl.program_id(1)
    nk = pl.num_programs(0)

    # ---- init this expert's accumulator on its first K tile ----
    @pl.when(kk == 0)
    def _init():
        acc_ref[e] = jnp.zeros(acc_ref.shape[1:], acc_ref.dtype)

    # ---- streamed backbone matmul: bf16 inputs, f32 MXU accumulation ----
    acc_ref[e] += jnp.dot(x_ref[...], bw_ref[0],
                          preferred_element_type=jnp.float32)

    # ---- per-expert tail on the last K tile: projector + L2 normalize ----
    @pl.when(kk == nk - 1)
    def _tail():
        feat = acc_ref[e].astype(jnp.bfloat16)                       # (Bp, Dfp)
        proj = jnp.dot(feat, pw_ref[e],
                       preferred_element_type=jnp.float32)           # (Bp, Hdp)
        # F.normalize(dim=-1): x / max(||x||, 1e-12) == x * rsqrt(max(||x||^2, 1e-24))
        nsq = jnp.sum(proj * proj, axis=-1, keepdims=True)
        s_e = proj * jax.lax.rsqrt(jnp.maximum(nsq, 1e-24))
        stacked_ref[e] = s_e          # dynamic store along untiled major expert axis

        # ---- routing epilogue fused into the very last grid step ----
        @pl.when(e == num_experts - 1)
        def _route():
            s = stacked_ref[...]                                     # (E, Bp, Hdp) f32
            bp = s.shape[1]
            hdp = s.shape[2]
            inv_temp = 1.0 / temp_ref[0]

            # similarities[b,e,f] = <s[e,b,:], s[f,b,:]> / temperature
            # Computed directly from the expert-major layout: E is tiny and
            # static, so E*E lane reductions replace any transpose/batched dot.
            imp_cols = []
            for ei in range(num_experts):
                cols = [jnp.sum(s[ei] * s[fi], axis=-1, keepdims=True)
                        for fi in range(num_experts)]
                row = jnp.concatenate(cols, axis=-1) * inv_temp      # (Bp, E)
                sims_ref[:, ei, :] = row
                imp_cols.append(jnp.mean(row, axis=-1, keepdims=True))
            importance = jnp.concatenate(imp_cols, axis=-1)          # (Bp, E)

            probs = 1.0 / (1.0 + jnp.exp(-importance))               # sigmoid
            probs = probs / (jnp.sum(probs, axis=-1, keepdims=True) + 1e-9)
            probs_ref[...] = probs

            # top-k (k small & static) via iterative masked argmax.
            # The -1.0 sentinel is safe ONLY because probs are normalized
            # sigmoids >= 0; ties break to the lowest index (matches lax.top_k).
            iota_e = jax.lax.broadcasted_iota(jnp.int32, (bp, num_experts), 1)
            masked = probs
            tk_w, tk_i = [], []
            for _ in range(top_k):
                m = jnp.max(masked, axis=-1, keepdims=True)                    # (Bp,1)
                idx = jnp.min(jnp.where(masked == m, iota_e, num_experts),
                              axis=-1, keepdims=True)                          # (Bp,1)
                tk_w.append(m)
                tk_i.append(idx)
                masked = jnp.where(iota_e == idx, -1.0, masked)
            tkw = jnp.concatenate(tk_w, axis=-1)                               # (Bp,k)
            tki = jnp.concatenate(tk_i, axis=-1)                               # (Bp,k) i32
            tkw = tkw / jnp.sum(tkw, axis=-1, keepdims=True)
            idx_ref[...] = tki
            w_ref[...] = tkw

            # combined[b] = sum_j tkw[b,j] * s[tki[b,j], b, :]  (one-hot gate, no gather)
            gate = jnp.zeros((bp, num_experts), jnp.float32)
            for j in range(top_k):
                sel = (iota_e == tki[:, j:j + 1]).astype(jnp.float32)
                gate = gate + sel * tkw[:, j:j + 1]
            comb = jnp.zeros((bp, hdp), jnp.float32)
            for ei in range(num_experts):
                comb = comb + gate[:, ei:ei + 1] * s[ei]
            combined_ref[...] = comb


# ---------------------------------------------------------------------------
# Wrapper
# ---------------------------------------------------------------------------
def image_encoder_forward(images, backbone_w, proj_w, temperature, top_k=2,
                          k_tile=512, vmem_limit_bytes=48 * 1024 * 1024):
    B = images.shape[0]
    E, Dimg, Dfeat = backbone_w.shape
    Hd = proj_w.shape[-1]

    # Lane/sublane padding (zeros are exact no-ops for matmul / norm / routing).
    Bp = _round_up(B, 8)
    Dfp = _round_up(Dfeat, 128)
    Hdp = _round_up(Hd, 128)
    tk = _round_up(min(k_tile, _round_up(Dimg, 128)), 128)
    Dip = _round_up(Dimg, tk)
    kt = Dip // tk

    # bf16 weight/activation streaming (kernel is HBM/weight-DMA bound); f32 acc.
    x = images.reshape(B, -1).astype(jnp.bfloat16)                 # (B, C*H*W)
    x = jnp.pad(x, ((0, Bp - B), (0, Dip - Dimg)))
    bw = jnp.pad(backbone_w.astype(jnp.bfloat16),
                 ((0, 0), (0, Dip - Dimg), (0, Dfp - Dfeat)))
    pw = jnp.pad(proj_w.astype(jnp.bfloat16),
                 ((0, 0), (0, Dfp - Dfeat), (0, Hdp - Hd)))
    temp = temperature.astype(jnp.float32)

    kernel = functools.partial(fused_encoder_kernel, num_experts=E, top_k=top_k)

    flops = 2 * E * Bp * Dip * Dfp + 2 * E * Bp * Dfp * Hdp + 2 * E * E * Bp * Hdp
    bytes_accessed = (int(x.size) + int(bw.size) + int(pw.size)) * 2 \
        + (E * Bp * Hdp + Bp * Hdp + Bp * E + Bp * E * E + 2 * Bp * top_k) * 4

    stacked, combined, probs, tki, tkw, sims = pl.pallas_call(
        kernel,
        out_shape=(
            jax.ShapeDtypeStruct((E, Bp, Hdp), jnp.float32),   # normalized expert feats
            jax.ShapeDtypeStruct((Bp, Hdp), jnp.float32),      # combined_features
            jax.ShapeDtypeStruct((Bp, E), jnp.float32),        # routing_probs
            jax.ShapeDtypeStruct((Bp, top_k), jnp.int32),      # selected_experts
            jax.ShapeDtypeStruct((Bp, top_k), jnp.float32),    # expert_weights
            jax.ShapeDtypeStruct((Bp, E, E), jnp.float32),     # similarities
        ),
        grid_spec=pltpu.PrefetchScalarGridSpec(
            num_scalar_prefetch=0,
            grid=(kt, E),                                      # K outer, experts inner
            in_specs=[
                pl.BlockSpec((Bp, tk), lambda kk, e: (0, kk)),        # x tile, resident over E
                pl.BlockSpec((1, tk, Dfp), lambda kk, e: (e, kk, 0)), # backbone weight K-tile
                pl.BlockSpec((E, Dfp, Hdp), lambda kk, e: (0, 0, 0)), # all projectors, resident
                pl.BlockSpec(memory_space=pltpu.MemorySpace.SMEM),    # temperature scalar
            ],
            out_specs=(
                pl.BlockSpec((E, Bp, Hdp), lambda kk, e: (0, 0, 0)),  # resident across grid
                pl.BlockSpec((Bp, Hdp), lambda kk, e: (0, 0)),
                pl.BlockSpec((Bp, E), lambda kk, e: (0, 0)),
                pl.BlockSpec((Bp, top_k), lambda kk, e: (0, 0)),
                pl.BlockSpec((Bp, top_k), lambda kk, e: (0, 0)),
                pl.BlockSpec((Bp, E, E), lambda kk, e: (0, 0, 0)),
            ),
            scratch_shapes=[pltpu.VMEM((E, Bp, Dfp), jnp.float32)],   # per-expert accumulators
        ),
        compiler_params=pltpu.CompilerParams(
            # Both axes sequential: per-expert accumulators span the K axis and
            # the fused routing epilogue on the last step reads all experts.
            dimension_semantics=("arbitrary", "arbitrary"),
            vmem_limit_bytes=vmem_limit_bytes,
        ),
        cost_estimate=pl.CostEstimate(flops=flops,
                                      transcendentals=Bp * E,
                                      bytes_accessed=bytes_accessed),
    )(x, bw, pw, temp)

    # Slice padding back off.
    combined = combined[:B, :Hd]
    probs = probs[:B]
    tki = tki[:B]          # int32 (PyTorch would return int64)
    tkw = tkw[:B]
    sims = sims[:B]

    aux_info = {
        "routing_probs": probs,
        "selected_experts": tki,
        "expert_weights": tkw,
        "similarities": sims,
        "expert_features": [stacked[e, :B, :Hd] for e in range(E)],
    }
    return combined, aux_info


# ---------------------------------------------------------------------------
# Demo / self-check
# ---------------------------------------------------------------------------
if __name__ == "__main__":
    key = jax.random.PRNGKey(0)
    B, C, Hi, Wi = 2, 4, 16, 16          # small image batch, NCHW
    E = len(MODEL_NAMES)                 # 3 experts
    Dimg = C * Hi * Wi                   # 1024
    Dfeat = 64                           # stand-in for backbone output_dim=768
    Hd = 32                              # stand-in for hidden_dim=768
    K = 2                                # top-k

    k1, k2, k3 = jax.random.split(key, 3)
    images = jax.random.normal(k1, (B, C, Hi, Wi), jnp.float32)
    backbone_w = jax.random.normal(k2, (E, Dimg, Dfeat), jnp.float32) * 0.02
    bound = 1.0 / (Dfeat ** 0.5)
    proj_w = jax.random.uniform(k3, (E, Dfeat, Hd), jnp.float32, -bound, bound)
    temperature = jnp.full((1,), 0.1, jnp.float32)

    combined, aux = image_encoder_forward(images, backbone_w, proj_w,
                                          temperature, top_k=K)
    jax.block_until_ready(combined)

    # ---- pure-JAX reference (mirrors bf16 streaming + f32 accumulation) ----
    xb = images.reshape(B, -1).astype(jnp.bfloat16)
    bwb = backbone_w.astype(jnp.bfloat16)
    pwb = proj_w.astype(jnp.bfloat16)
    feats = jnp.einsum("bd,edf->ebf", xb, bwb, preferred_element_type=jnp.float32)
    proj = jnp.einsum("ebf,efh->ebh", feats.astype(jnp.bfloat16), pwb,
                      preferred_element_type=jnp.float32)
    nsq = jnp.sum(proj * proj, axis=-1, keepdims=True)
    proj = proj * jax.lax.rsqrt(jnp.maximum(nsq, 1e-24))               # (E,B,Hd)
    st = jnp.transpose(proj, (1, 0, 2))                                # (B,E,Hd)
    inv_t = 1.0 / temperature[0]
    sims_ref = jnp.einsum("beh,bfh->bef", st, st,
                          preferred_element_type=jnp.float32) * inv_t
    imp = sims_ref.mean(axis=2)
    p = jax.nn.sigmoid(imp)
    p = p / (p.sum(axis=-1, keepdims=True) + 1e-9)
    tw, ti = jax.lax.top_k(p, K)
    tw = tw / tw.sum(axis=-1, keepdims=True)
    gate = jnp.zeros((B, E), jnp.float32)
    for j in range(K):
        gate = gate + (jnp.arange(E)[None, :] == ti[:, j:j + 1]).astype(jnp.float32) \
            * tw[:, j:j + 1]
    comb_ref = jnp.einsum("be,beh->bh", gate, st)

    for e in range(E):
        assert jnp.allclose(aux["expert_features"][e], proj[e],
                            atol=2e-3, rtol=2e-3), "expert feature mismatch"
    assert jnp.allclose(aux["similarities"], sims_ref, atol=5e-3, rtol=5e-3), \
        "similarities mismatch"
    assert jnp.allclose(aux["routing_probs"], p, atol=2e-3, rtol=2e-3), \
        "routing probs mismatch"
    assert jnp.allclose(combined, comb_ref, atol=2e-3, rtol=2e-3), \
        "combined features mismatch"

    print("KERNEL_OK")
</pallas_src>

<mosaic_0001>
module attributes {stable_mosaic.version = 11 : i64} {
  func.func @fused_encoder_kernel(%arg0: i32, %arg1: i32, %arg2: memref<8x512xbf16, #tpu.memory_space<vmem>>, %arg3: memref<1x512x128xbf16, #tpu.memory_space<vmem>>, %arg4: memref<3x128x128xbf16, #tpu.memory_space<vmem>>, %arg5: memref<1xf32, #tpu.memory_space<smem>>, %arg6: memref<3x8x128xf32, #tpu.memory_space<vmem>>, %arg7: memref<8x128xf32, #tpu.memory_space<vmem>>, %arg8: memref<8x3xf32, #tpu.memory_space<vmem>>, %arg9: memref<8x2xi32, #tpu.memory_space<vmem>>, %arg10: memref<8x2xf32, #tpu.memory_space<vmem>>, %arg11: memref<8x3x3xf32, #tpu.memory_space<vmem>>, %arg12: memref<3x8x128xf32, #tpu.memory_space<vmem>>) attributes {dimension_semantics = [#tpu.dimension_semantics<arbitrary>, #tpu.dimension_semantics<arbitrary>], iteration_bounds = array<i64: 2, 3>, scalar_prefetch = 0 : i64, scratch_operands = 1 : i64, tpu.core_type = #tpu.core_type<tc>, window_params = [{transform_indices = @transform_0, window_bounds = array<i64: 8, 512>}, {transform_indices = @transform_1, window_bounds = array<i64: 1, 512, 128>}, {pipeline_mode = #tpu.pipeline_mode<synchronous>, transform_indices = @transform_2, window_bounds = array<i64: 3, 128, 128>}, {transform_indices = @transform_3, window_bounds = array<i64: 1>}, {pipeline_mode = #tpu.pipeline_mode<synchronous>, transform_indices = @transform_4, window_bounds = array<i64: 3, 8, 128>}, {pipeline_mode = #tpu.pipeline_mode<synchronous>, transform_indices = @transform_5, window_bounds = array<i64: 8, 128>}, {pipeline_mode = #tpu.pipeline_mode<synchronous>, transform_indices = @transform_6, window_bounds = array<i64: 8, 3>}, {pipeline_mode = #tpu.pipeline_mode<synchronous>, transform_indices = @transform_7, window_bounds = array<i64: 8, 2>}, {pipeline_mode = #tpu.pipeline_mode<synchronous>, transform_indices = @transform_8, window_bounds = array<i64: 8, 2>}, {pipeline_mode = #tpu.pipeline_mode<synchronous>, transform_indices = @transform_9, window_bounds = array<i64: 8, 3, 3>}]} {
    %c0_i32 = arith.constant 0 : i32
    %0 = arith.cmpi eq, %arg0, %c0_i32 : i32
    %1 = arith.extui %0 : i1 to i32
    %c0_i32_0 = arith.constant 0 : i32
    %2 = arith.cmpi ne, %1, %c0_i32_0 : i32
    scf.if %2 {
      %cst_10 = arith.constant 0.000000e+00 : f32
      %18 = vector.broadcast %cst_10 : f32 to vector<8x128xf32>
      %19 = arith.index_cast %arg1 : i32 to index
      %c0_11 = arith.constant 0 : index
      %c0_12 = arith.constant 0 : index
      %20 = vector.load %arg12[%19, %c0_11, %c0_12] : memref<3x8x128xf32, #tpu.memory_space<vmem>>, vector<1x8x128xf32>
      %21 = vector.shape_cast %20 : vector<1x8x128xf32> to vector<8x128xf32>
      %22 = vector.shape_cast %18 : vector<8x128xf32> to vector<1x8x128xf32>
      tpu.vector_store %arg12[%19, %c0_11, %c0_12], %22 {strides = array<i32>} : memref<3x8x128xf32, #tpu.memory_space<vmem>>, vector<1x8x128xf32>,
    } else {
    }
    %3 = arith.index_cast %arg1 : i32 to index
    %c0 = arith.constant 0 : index
    %c0_1 = arith.constant 0 : index
    %4 = vector.load %arg12[%3, %c0, %c0_1] : memref<3x8x128xf32, #tpu.memory_space<vmem>>, vector<1x8x128xf32>
    %5 = vector.shape_cast %4 : vector<1x8x128xf32> to vector<8x128xf32>
    %c0_2 = arith.constant 0 : index
    %c0_3 = arith.constant 0 : index
    %6 = vector.load %arg2[%c0_2, %c0_3] : memref<8x512xbf16, #tpu.memory_space<vmem>>, vector<8x512xbf16>
    %c0_4 = arith.constant 0 : index
    %c0_5 = arith.constant 0 : index
    %c0_6 = arith.constant 0 : index
    %7 = vector.load %arg3[%c0_4, %c0_5, %c0_6] : memref<1x512x128xbf16, #tpu.memory_space<vmem>>, vector<1x512x128xbf16>
    %8 = vector.shape_cast %7 : vector<1x512x128xbf16> to vector<512x128xbf16>
    %cst = arith.constant dense<0.000000e+00> : vector<8x128xf32>
    %9 = tpu.matmul %6, %8, %cst {dimension_numbers = #tpu.dot_dimension_numbers<[1], [0], [0], [1], [0, 0, 1, 1], [], []>} : vector<8x512xbf16>, vector<512x128xbf16>, vector<8x128xf32> -> vector<8x128xf32>
    %10 = arith.addf %5, %9 : vector<8x128xf32>
    %11 = arith.index_cast %arg1 : i32 to index
    %c0_7 = arith.constant 0 : index
    %c0_8 = arith.constant 0 : index
    %12 = vector.load %arg12[%11, %c0_7, %c0_8] : memref<3x8x128xf32, #tpu.memory_space<vmem>>, vector<1x8x128xf32>
    %13 = vector.shape_cast %12 : vector<1x8x128xf32> to vector<8x128xf32>
    %14 = vector.shape_cast %10 : vector<8x128xf32> to vector<1x8x128xf32>
    tpu.vector_store %arg12[%11, %c0_7, %c0_8], %14 {strides = array<i32>} : memref<3x8x128xf32, #tpu.memory_space<vmem>>, vector<1x8x128xf32>,
    %c1_i32 = arith.constant 1 : i32
    %15 = arith.cmpi eq, %arg0, %c1_i32 : i32
    %16 = arith.extui %15 : i1 to i32
    %c0_i32_9 = arith.constant 0 : i32
    %17 = arith.cmpi ne, %16, %c0_i32_9 : i32
    scf.if %17 {
      %18 = arith.index_cast %arg1 : i32 to index
      %c0_10 = arith.constant 0 : index
      %c0_11 = arith.constant 0 : index
      %19 = vector.load %arg12[%18, %c0_10, %c0_11] : memref<3x8x128xf32, #tpu.memory_space<vmem>>, vector<1x8x128xf32>
      %20 = vector.shape_cast %19 : vector<1x8x128xf32> to vector<8x128xf32>
      %21 = arith.truncf %20 : vector<8x128xf32> to vector<8x128xbf16>
      %22 = arith.index_cast %arg1 : i32 to index
      %c0_12 = arith.constant 0 : index
      %c0_13 = arith.constant 0 : index
      %23 = vector.load %arg4[%22, %c0_12, %c0_13] : memref<3x128x128xbf16, #tpu.memory_space<vmem>>, vector<1x128x128xbf16>
      %24 = vector.shape_cast %23 : vector<1x128x128xbf16> to vector<128x128xbf16>
      %cst_14 = arith.constant dense<0.000000e+00> : vector<8x128xf32>
      %25 = tpu.matmul %21, %24, %cst_14 {dimension_numbers = #tpu.dot_dimension_numbers<[1], [0], [0], [1], [0, 0, 1, 1], [], []>} : vector<8x128xbf16>, vector<128x128xbf16>, vector<8x128xf32> -> vector<8x128xf32>
      %26 = arith.mulf %25, %25 : vector<8x128xf32>
      %cst_15 = arith.constant dense<0.000000e+00> : vector<8xf32>
      %27 = vector.multi_reduction <add>, %26, %cst_15 [1] : vector<8x128xf32> to vector<8xf32>
      %28 = vector.shape_cast %27 : vector<8xf32> to vector<8x1xf32>
      %cst_16 = arith.constant 1.000000e-24 : f32
      %29 = vector.broadcast %cst_16 : f32 to vector<8x1xf32>
      %30 = arith.maximumf %28, %29 : vector<8x1xf32>
      %31 = math.rsqrt %30 : vector<8x1xf32>
      %32 = vector.broadcast %31 : vector<8x1xf32> to vector<8x128xf32>
      %33 = arith.mulf %25, %32 : vector<8x128xf32>
      %34 = arith.index_cast %arg1 : i32 to index
      %c0_17 = arith.constant 0 : index
      %c0_18 = arith.constant 0 : index
      %35 = vector.load %arg6[%34, %c0_17, %c0_18] : memref<3x8x128xf32, #tpu.memory_space<vmem>>, vector<1x8x128xf32>
      %36 = vector.shape_cast %35 : vector<1x8x128xf32> to vector<8x128xf32>
      %37 = vector.shape_cast %33 : vector<8x128xf32> to vector<1x8x128xf32>
      tpu.vector_store %arg6[%34, %c0_17, %c0_18], %37 {strides = array<i32>} : memref<3x8x128xf32, #tpu.memory_space<vmem>>, vector<1x8x128xf32>,
      %c2_i32 = arith.constant 2 : i32
      %38 = arith.cmpi eq, %arg1, %c2_i32 : i32
      %39 = arith.extui %38 : i1 to i32
      %c0_i32_19 = arith.constant 0 : i32
      %40 = arith.cmpi ne, %39, %c0_i32_19 : i32
      scf.if %40 {
        %c0_20 = arith.constant 0 : index
        %c0_21 = arith.constant 0 : index
        %c0_22 = arith.constant 0 : index
        %41 = vector.load %arg6[%c0_20, %c0_21, %c0_22] : memref<3x8x128xf32, #tpu.memory_space<vmem>>, vector<3x8x128xf32>
        %c0_23 = arith.constant 0 : index
        %42 = memref.load %arg5[%c0_23] : memref<1xf32, #tpu.memory_space<smem>>
        %cst_24 = arith.constant 1.000000e+00 : f32
        %43 = arith.divf %cst_24, %42 : f32
        %44 = vector.extract_strided_slice %41 {offsets = [0, 0, 0], sizes = [1, 8, 128], strides = [1, 1, 1]} : vector<3x8x128xf32> to vector<1x8x128xf32>
        %45 = vector.shape_cast %44 : vector<1x8x128xf32> to vector<8x128xf32>
        %46 = vector.extract_strided_slice %41 {offsets = [0, 0, 0], sizes = [1, 8, 128], strides = [1, 1, 1]} : vector<3x8x128xf32> to vector<1x8x128xf32>
        %47 = vector.shape_cast %46 : vector<1x8x128xf32> to vector<8x128xf32>
        %48 = arith.mulf %45, %47 : vector<8x128xf32>
        %cst_25 = arith.constant dense<0.000000e+00> : vector<8xf32>
        %49 = vector.multi_reduction <add>, %48, %cst_25 [1] : vector<8x128xf32> to vector<8xf32>
        %50 = vector.shape_cast %49 : vector<8xf32> to vector<8x1xf32>
        %51 = vector.extract_strided_slice %41 {offsets = [0, 0, 0], sizes = [1, 8, 128], strides = [1, 1, 1]} : vector<3x8x128xf32> to vector<1x8x128xf32>
        %52 = vector.shape_cast %51 : vector<1x8x128xf32> to vector<8x128xf32>
        %53 = vector.extract_strided_slice %41 {offsets = [1, 0, 0], sizes = [1, 8, 128], strides = [1, 1, 1]} : vector<3x8x128xf32> to vector<1x8x128xf32>
        %54 = vector.shape_cast %53 : vector<1x8x128xf32> to vector<8x128xf32>
        %55 = arith.mulf %52, %54 : vector<8x128xf32>
        %cst_26 = arith.constant dense<0.000000e+00> : vector<8xf32>
        %56 = vector.multi_reduction <add>, %55, %cst_26 [1] : vector<8x128xf32> to vector<8xf32>
        %57 = vector.shape_cast %56 : vector<8xf32> to vector<8x1xf32>
        %58 = vector.extract_strided_slice %41 {offsets = [0, 0, 0], sizes = [1, 8, 128], strides = [1, 1, 1]} : vector<3x8x128xf32> to vector<1x8x128xf32>
        %59 = vector.shape_cast %58 : vector<1x8x128xf32> to vector<8x128xf32>
        %60 = vector.extract_strided_slice %41 {offsets = [2, 0, 0], sizes = [1, 8, 128], strides = [1, 1, 1]} : vector<3x8x128xf32> to vector<1x8x128xf32>
        %61 = vector.shape_cast %60 : vector<1x8x128xf32> to vector<8x128xf32>
        %62 = arith.mulf %59, %61 : vector<8x128xf32>
        %cst_27 = arith.constant dense<0.000000e+00> : vector<8xf32>
        %63 = vector.multi_reduction <add>, %62, %cst_27 [1] : vector<8x128xf32> to vector<8xf32>
        %64 = vector.shape_cast %63 : vector<8xf32> to vector<8x1xf32>
        %65 = tpu.concatenate %50, %57, %64 in 1 : vector<8x1xf32>, vector<8x1xf32>, vector<8x1xf32> -> vector<8x3xf32>
        %66 = vector.broadcast %43 : f32 to vector<8x3xf32>
        %67 = arith.mulf %65, %66 : vector<8x3xf32>
        %c0_28 = arith.constant 0 : index
        %c0_29 = arith.constant 0 : index
        %c0_30 = arith.constant 0 : index
        %68 = vector.load %arg11[%c0_28, %c0_29, %c0_30] : memref<8x3x3xf32, #tpu.memory_space<vmem>>, vector<8x1x3xf32>
        %69 = vector.shape_cast %68 : vector<8x1x3xf32> to vector<8x3xf32>
        %70 = vector.shape_cast %67 : vector<8x3xf32> to vector<8x1x3xf32>
        tpu.vector_store %arg11[%c0_28, %c0_29, %c0_30], %70 {strides = array<i32>} : memref<8x3x3xf32, #tpu.memory_space<vmem>>, vector<8x1x3xf32>,
        %cst_31 = arith.constant dense<0.000000e+00> : vector<8xf32>
        %71 = vector.multi_reduction <add>, %67, %cst_31 [1] : vector<8x3xf32> to vector<8xf32>
        %72 = vector.shape_cast %71 : vector<8xf32> to vector<8x1xf32>
        %cst_32 = arith.constant 3.000000e+00 : f32
        %73 = vector.broadcast %cst_32 : f32 to vector<8x1xf32>
        %74 = arith.divf %72, %73 : vector<8x1xf32>
        %75 = vector.extract_strided_slice %41 {offsets = [1, 0, 0], sizes = [1, 8, 128], strides = [1, 1, 1]} : vector<3x8x128xf32> to vector<1x8x128xf32>
        %76 = vector.shape_cast %75 : vector<1x8x128xf32> to vector<8x128xf32>
        %77 = vector.extract_strided_slice %41 {offsets = [0, 0, 0], sizes = [1, 8, 128], strides = [1, 1, 1]} : vector<3x8x128xf32> to vector<1x8x128xf32>
        %78 = vector.shape_cast %77 : vector<1x8x128xf32> to vector<8x128xf32>
        %79 = arith.mulf %76, %78 : vector<8x128xf32>
        %cst_33 = arith.constant dense<0.000000e+00> : vector<8xf32>
        %80 = vector.multi_reduction <add>, %79, %cst_33 [1] : vector<8x128xf32> to vector<8xf32>
        %81 = vector.shape_cast %80 : vector<8xf32> to vector<8x1xf32>
        %82 = vector.extract_strided_slice %41 {offsets = [1, 0, 0], sizes = [1, 8, 128], strides = [1, 1, 1]} : vector<3x8x128xf32> to vector<1x8x128xf32>
        %83 = vector.shape_cast %82 : vector<1x8x128xf32> to vector<8x128xf32>
        %84 = vector.extract_strided_slice %41 {offsets = [1, 0, 0], sizes = [1, 8, 128], strides = [1, 1, 1]} : vector<3x8x128xf32> to vector<1x8x128xf32>
        %85 = vector.shape_cast %84 : vector<1x8x128xf32> to vector<8x128xf32>
        %86 = arith.mulf %83, %85 : vector<8x128xf32>
        %cst_34 = arith.constant dense<0.000000e+00> : vector<8xf32>
        %87 = vector.multi_reduction <add>, %86, %cst_34 [1] : vector<8x128xf32> to vector<8xf32>
        %88 = vector.shape_cast %87 : vector<8xf32> to vector<8x1xf32>
        %89 = vector.extract_strided_slice %41 {offsets = [1, 0, 0], sizes = [1, 8, 128], strides = [1, 1, 1]} : vector<3x8x128xf32> to vector<1x8x128xf32>
        %90 = vector.shape_cast %89 : vector<1x8x128xf32> to vector<8x128xf32>
        %91 = vector.extract_strided_slice %41 {offsets = [2, 0, 0], sizes = [1, 8, 128], strides = [1, 1, 1]} : vector<3x8x128xf32> to vector<1x8x128xf32>
        %92 = vector.shape_cast %91 : vector<1x8x128xf32> to vector<8x128xf32>
        %93 = arith.mulf %90, %92 : vector<8x128xf32>
        %cst_35 = arith.constant dense<0.000000e+00> : vector<8xf32>
        %94 = vector.multi_reduction <add>, %93, %cst_35 [1] : vector<8x128xf32> to vector<8xf32>
        %95 = vector.shape_cast %94 : vector<8xf32> to vector<8x1xf32>
        %96 = tpu.concatenate %81, %88, %95 in 1 : vector<8x1xf32>, vector<8x1xf32>, vector<8x1xf32> -> vector<8x3xf32>
        %97 = vector.broadcast %43 : f32 to vector<8x3xf32>
        %98 = arith.mulf %96, %97 : vector<8x3xf32>
        %c0_36 = arith.constant 0 : index
        %c1 = arith.constant 1 : index
        %c0_37 = arith.constant 0 : index
        %99 = vector.load %arg11[%c0_36, %c1, %c0_37] : memref<8x3x3xf32, #tpu.memory_space<vmem>>, vector<8x1x3xf32>
        %100 = vector.shape_cast %99 : vector<8x1x3xf32> to vector<8x3xf32>
        %101 = vector.shape_cast %98 : vector<8x3xf32> to vector<8x1x3xf32>
        tpu.vector_store %arg11[%c0_36, %c1, %c0_37], %101 {strides = array<i32>} : memref<8x3x3xf32, #tpu.memory_space<vmem>>, vector<8x1x3xf32>,
        %cst_38 = arith.constant dense<0.000000e+00> : vector<8xf32>
        %102 = vector.multi_reduction <add>, %98, %cst_38 [1] : vector<8x3xf32> to vector<8xf32>
        %103 = vector.shape_cast %102 : vector<8xf32> to vector<8x1xf32>
        %cst_39 = arith.constant 3.000000e+00 : f32
        %104 = vector.broadcast %cst_39 : f32 to vector<8x1xf32>
        %105 = arith.divf %103, %104 : vector<8x1xf32>
        %106 = vector.extract_strided_slice %41 {offsets = [2, 0, 0], sizes = [1, 8, 128], strides = [1, 1, 1]} : vector<3x8x128xf32> to vector<1x8x128xf32>
        %107 = vector.shape_cast %106 : vector<1x8x128xf32> to vector<8x128xf32>
        %108 = vector.extract_strided_slice %41 {offsets = [0, 0, 0], sizes = [1, 8, 128], strides = [1, 1, 1]} : vector<3x8x128xf32> to vector<1x8x128xf32>
        %109 = vector.shape_cast %108 : vector<1x8x128xf32> to vector<8x128xf32>
        %110 = arith.mulf %107, %109 : vector<8x128xf32>
        %cst_40 = arith.constant dense<0.000000e+00> : vector<8xf32>
        %111 = vector.multi_reduction <add>, %110, %cst_40 [1] : vector<8x128xf32> to vector<8xf32>
        %112 = vector.shape_cast %111 : vector<8xf32> to vector<8x1xf32>
        %113 = vector.extract_strided_slice %41 {offsets = [2, 0, 0], sizes = [1, 8, 128], strides = [1, 1, 1]} : vector<3x8x128xf32> to vector<1x8x128xf32>
        %114 = vector.shape_cast %113 : vector<1x8x128xf32> to vector<8x128xf32>
        %115 = vector.extract_strided_slice %41 {offsets = [1, 0, 0], sizes = [1, 8, 128], strides = [1, 1, 1]} : vector<3x8x128xf32> to vector<1x8x128xf32>
        %116 = vector.shape_cast %115 : vector<1x8x128xf32> to vector<8x128xf32>
        %117 = arith.mulf %114, %116 : vector<8x128xf32>
        %cst_41 = arith.constant dense<0.000000e+00> : vector<8xf32>
        %118 = vector.multi_reduction <add>, %117, %cst_41 [1] : vector<8x128xf32> to vector<8xf32>
        %119 = vector.shape_cast %118 : vector<8xf32> to vector<8x1xf32>
        %120 = vector.extract_strided_slice %41 {offsets = [2, 0, 0], sizes = [1, 8, 128], strides = [1, 1, 1]} : vector<3x8x128xf32> to vector<1x8x128xf32>
        %121 = vector.shape_cast %120 : vector<1x8x128xf32> to vector<8x128xf32>
        %122 = vector.extract_strided_slice %41 {offsets = [2, 0, 0], sizes = [1, 8, 128], strides = [1, 1, 1]} : vector<3x8x128xf32> to vector<1x8x128xf32>
        %123 = vector.shape_cast %122 : vector<1x8x128xf32> to vector<8x128xf32>
        %124 = arith.mulf %121, %123 : vector<8x128xf32>
        %cst_42 = arith.constant dense<0.000000e+00> : vector<8xf32>
        %125 = vector.multi_reduction <add>, %124, %cst_42 [1] : vector<8x128xf32> to vector<8xf32>
        %126 = vector.shape_cast %125 : vector<8xf32> to vector<8x1xf32>
        %127 = tpu.concatenate %112, %119, %126 in 1 : vector<8x1xf32>, vector<8x1xf32>, vector<8x1xf32> -> vector<8x3xf32>
        %128 = vector.broadcast %43 : f32 to vector<8x3xf32>
        %129 = arith.mulf %127, %128 : vector<8x3xf32>
        %c0_43 = arith.constant 0 : index
        %c2 = arith.constant 2 : index
        %c0_44 = arith.constant 0 : index
        %130 = vector.load %arg11[%c0_43, %c2, %c0_44] : memref<8x3x3xf32, #tpu.memory_space<vmem>>, vector<8x1x3xf32>
        %131 = vector.shape_cast %130 : vector<8x1x3xf32> to vector<8x3xf32>
        %132 = vector.shape_cast %129 : vector<8x3xf32> to vector<8x1x3xf32>
        tpu.vector_store %arg11[%c0_43, %c2, %c0_44], %132 {strides = array<i32>} : memref<8x3x3xf32, #tpu.memory_space<vmem>>, vector<8x1x3xf32>,
        %cst_45 = arith.constant dense<0.000000e+00> : vector<8xf32>
        %133 = vector.multi_reduction <add>, %129, %cst_45 [1] : vector<8x3xf32> to vector<8xf32>
        %134 = vector.shape_cast %133 : vector<8xf32> to vector<8x1xf32>
        %cst_46 = arith.constant 3.000000e+00 : f32
        %135 = vector.broadcast %cst_46 : f32 to vector<8x1xf32>
        %136 = arith.divf %134, %135 : vector<8x1xf32>
        %137 = tpu.concatenate %74, %105, %136 in 1 : vector<8x1xf32>, vector<8x1xf32>, vector<8x1xf32> -> vector<8x3xf32>
        %cst_47 = arith.constant 0.000000e+00 : f32
        %138 = vector.broadcast %cst_47 : f32 to vector<8x3xf32>
        %139 = arith.subf %138, %137 : vector<8x3xf32>
        %140 = math.exp %139 : vector<8x3xf32>
        %cst_48 = arith.constant 1.000000e+00 : f32
        %141 = vector.broadcast %cst_48 : f32 to vector<8x3xf32>
        %142 = arith.addf %141, %140 : vector<8x3xf32>
        %cst_49 = arith.constant 1.000000e+00 : f32
        %143 = vector.broadcast %cst_49 : f32 to vector<8x3xf32>
        %144 = arith.divf %143, %142 : vector<8x3xf32>
        %cst_50 = arith.constant dense<0.000000e+00> : vector<8xf32>
        %145 = vector.multi_reduction <add>, %144, %cst_50 [1] : vector<8x3xf32> to vector<8xf32>
        %146 = vector.shape_cast %145 : vector<8xf32> to vector<8x1xf32>
        %cst_51 = arith.constant 9.99999971E-10 : f32
        %147 = vector.broadcast %cst_51 : f32 to vector<8x1xf32>
        %148 = arith.addf %146, %147 : vector<8x1xf32>
        %149 = vector.broadcast %148 : vector<8x1xf32> to vector<8x3xf32>
        %150 = arith.divf %144, %149 : vector<8x3xf32>
        %c0_52 = arith.constant 0 : index
        %c0_53 = arith.constant 0 : index
        %151 = vector.load %arg8[%c0_52, %c0_53] : memref<8x3xf32, #tpu.memory_space<vmem>>, vector<8x3xf32>
        tpu.vector_store %arg8[%c0_52, %c0_53], %150 {strides = array<i32>} : memref<8x3xf32, #tpu.memory_space<vmem>>, vector<8x3xf32>,
        %152 = tpu.iota {dimensions = array<i32: 1>} : vector<8x3xi32>
        %cst_54 = arith.constant dense<0xFF800000> : vector<8xf32>
        %153 = vector.multi_reduction <maximumf>, %150, %cst_54 [1] : vector<8x3xf32> to vector<8xf32>
        %154 = vector.shape_cast %153 : vector<8xf32> to vector<8x1xf32>
        %155 = vector.broadcast %154 : vector<8x1xf32> to vector<8x3xf32>
        %156 = arith.cmpf oeq, %150, %155 : vector<8x3xf32>
        %c3_i32 = arith.constant 3 : i32
        %157 = vector.broadcast %c3_i32 : i32 to vector<8x3xi32>
        %158 = arith.select %156, %152, %157 : vector<8x3xi1>, vector<8x3xi32>
        %cst_55 = arith.constant dense<2147483647> : vector<8xi32>
        %159 = vector.multi_reduction <minsi>, %158, %cst_55 [1] : vector<8x3xi32> to vector<8xi32>
        %160 = vector.shape_cast %159 : vector<8xi32> to vector<8x1xi32>
        %161 = vector.broadcast %160 : vector<8x1xi32> to vector<8x3xi32>
        %162 = arith.cmpi eq, %152, %161 : vector<8x3xi32>
        %cst_56 = arith.constant -1.000000e+00 : f32
        %163 = vector.broadcast %cst_56 : f32 to vector<8x3xf32>
        %164 = arith.select %162, %163, %150 : vector<8x3xi1>, vector<8x3xf32>
        %cst_57 = arith.constant dense<0xFF800000> : vector<8xf32>
        %165 = vector.multi_reduction <maximumf>, %164, %cst_57 [1] : vector<8x3xf32> to vector<8xf32>
        %166 = vector.shape_cast %165 : vector<8xf32> to vector<8x1xf32>
        %167 = vector.broadcast %166 : vector<8x1xf32> to vector<8x3xf32>
        %168 = arith.cmpf oeq, %164, %167 : vector<8x3xf32>
        %c3_i32_58 = arith.constant 3 : i32
        %169 = vector.broadcast %c3_i32_58 : i32 to vector<8x3xi32>
        %170 = arith.select %168, %152, %169 : vector<8x3xi1>, vector<8x3xi32>
        %cst_59 = arith.constant dense<2147483647> : vector<8xi32>
        %171 = vector.multi_reduction <minsi>, %170, %cst_59 [1] : vector<8x3xi32> to vector<8xi32>
        %172 = vector.shape_cast %171 : vector<8xi32> to vector<8x1xi32>
        %173 = tpu.concatenate %154, %166 in 1 : vector<8x1xf32>, vector<8x1xf32> -> vector<8x2xf32>
        %174 = tpu.concatenate %160, %172 in 1 : vector<8x1xi32>, vector<8x1xi32> -> vector<8x2xi32>
        %cst_60 = arith.constant dense<0.000000e+00> : vector<8xf32>
        %175 = vector.multi_reduction <add>, %173, %cst_60 [1] : vector<8x2xf32> to vector<8xf32>
        %176 = vector.shape_cast %175 : vector<8xf32> to vector<8x1xf32>
        %177 = vector.broadcast %176 : vector<8x1xf32> to vector<8x2xf32>
        %178 = arith.divf %173, %177 : vector<8x2xf32>
        %c0_61 = arith.constant 0 : index
        %c0_62 = arith.constant 0 : index
        %179 = vector.load %arg9[%c0_61, %c0_62] : memref<8x2xi32, #tpu.memory_space<vmem>>, vector<8x2xi32>
        tpu.vector_store %arg9[%c0_61, %c0_62], %174 {strides = array<i32>} : memref<8x2xi32, #tpu.memory_space<vmem>>, vector<8x2xi32>,
        %c0_63 = arith.constant 0 : index
        %c0_64 = arith.constant 0 : index
        %180 = vector.load %arg10[%c0_63, %c0_64] : memref<8x2xf32, #tpu.memory_space<vmem>>, vector<8x2xf32>
        tpu.vector_store %arg10[%c0_63, %c0_64], %178 {strides = array<i32>} : memref<8x2xf32, #tpu.memory_space<vmem>>, vector<8x2xf32>,
        %cst_65 = arith.constant 0.000000e+00 : f32
        %181 = vector.broadcast %cst_65 : f32 to vector<8x3xf32>
        %182 = vector.extract_strided_slice %174 {offsets = [0, 0], sizes = [8, 1], strides = [1, 1]} : vector<8x2xi32> to vector<8x1xi32>
        %183 = vector.broadcast %182 : vector<8x1xi32> to vector<8x3xi32>
        %184 = arith.cmpi eq, %152, %183 : vector<8x3xi32>
        %185 = arith.extui %184 : vector<8x3xi1> to vector<8x3xi32>
        %186 = arith.sitofp %185 : vector<8x3xi32> to vector<8x3xf32>
        %187 = vector.extract_strided_slice %178 {offsets = [0, 0], sizes = [8, 1], strides = [1, 1]} : vector<8x2xf32> to vector<8x1xf32>
        %188 = vector.broadcast %187 : vector<8x1xf32> to vector<8x3xf32>
        %189 = arith.mulf %186, %188 : vector<8x3xf32>
        %190 = arith.addf %181, %189 : vector<8x3xf32>
        %191 = vector.extract_strided_slice %174 {offsets = [0, 1], sizes = [8, 1], strides = [1, 1]} : vector<8x2xi32> to vector<8x1xi32>
        %192 = vector.broadcast %191 : vector<8x1xi32> to vector<8x3xi32>
        %193 = arith.cmpi eq, %152, %192 : vector<8x3xi32>
        %194 = arith.extui %193 : vector<8x3xi1> to vector<8x3xi32>
        %195 = arith.sitofp %194 : vector<8x3xi32> to vector<8x3xf32>
        %196 = vector.extract_strided_slice %178 {offsets = [0, 1], sizes = [8, 1], strides = [1, 1]} : vector<8x2xf32> to vector<8x1xf32>
        %197 = vector.broadcast %196 : vector<8x1xf32> to vector<8x3xf32>
        %198 = arith.mulf %195, %197 : vector<8x3xf32>
        %199 = arith.addf %190, %198 : vector<8x3xf32>
        %cst_66 = arith.constant 0.000000e+00 : f32
        %200 = vector.broadcast %cst_66 : f32 to vector<8x128xf32>
        %201 = vector.extract_strided_slice %199 {offsets = [0, 0], sizes = [8, 1], strides = [1, 1]} : vector<8x3xf32> to vector<8x1xf32>
        %202 = vector.extract_strided_slice %41 {offsets = [0, 0, 0], sizes = [1, 8, 128], strides = [1, 1, 1]} : vector<3x8x128xf32> to vector<1x8x128xf32>
        %203 = vector.shape_cast %202 : vector<1x8x128xf32> to vector<8x128xf32>
        %204 = vector.broadcast %201 : vector<8x1xf32> to vector<8x128xf32>
        %205 = arith.mulf %204, %203 : vector<8x128xf32>
        %206 = arith.addf %200, %205 : vector<8x128xf32>
        %207 = vector.extract_strided_slice %199 {offsets = [0, 1], sizes = [8, 1], strides = [1, 1]} : vector<8x3xf32> to vector<8x1xf32>
        %208 = vector.extract_strided_slice %41 {offsets = [1, 0, 0], sizes = [1, 8, 128], strides = [1, 1, 1]} : vector<3x8x128xf32> to vector<1x8x128xf32>
        %209 = vector.shape_cast %208 : vector<1x8x128xf32> to vector<8x128xf32>
        %210 = vector.broadcast %207 : vector<8x1xf32> to vector<8x128xf32>
        %211 = arith.mulf %210, %209 : vector<8x128xf32>
        %212 = arith.addf %206, %211 : vector<8x128xf32>
        %213 = vector.extract_strided_slice %199 {offsets = [0, 2], sizes = [8, 1], strides = [1, 1]} : vector<8x3xf32> to vector<8x1xf32>
        %214 = vector.extract_strided_slice %41 {offsets = [2, 0, 0], sizes = [1, 8, 128], strides = [1, 1, 1]} : vector<3x8x128xf32> to vector<1x8x128xf32>
        %215 = vector.shape_cast %214 : vector<1x8x128xf32> to vector<8x128xf32>
        %216 = vector.broadcast %213 : vector<8x1xf32> to vector<8x128xf32>
        %217 = arith.mulf %216, %215 : vector<8x128xf32>
        %218 = arith.addf %212, %217 : vector<8x128xf32>
        %c0_67 = arith.constant 0 : index
        %c0_68 = arith.constant 0 : index
        %219 = vector.load %arg7[%c0_67, %c0_68] : memref<8x128xf32, #tpu.memory_space<vmem>>, vector<8x128xf32>
        tpu.vector_store %arg7[%c0_67, %c0_68], %218 {strides = array<i32>} : memref<8x128xf32, #tpu.memory_space<vmem>>, vector<8x128xf32>,
      } else {
      }
    } else {
    }
    return
  }
  func.func @transform_0(%arg0: i32, %arg1: i32) -> (i32, i32) {
    %c0_i32 = arith.constant 0 : i32
    %c0_i32_0 = arith.constant 0 : i32
    return %c0_i32, %arg0 : i32, i32
  }
  func.func @transform_1(%arg0: i32, %arg1: i32) -> (i32, i32, i32) {
    %c0_i32 = arith.constant 0 : i32
    %c0_i32_0 = arith.constant 0 : i32
    return %arg1, %arg0, %c0_i32 : i32, i32, i32
  }
  func.func @transform_2(%arg0: i32, %arg1: i32) -> (i32, i32, i32) {
    %c0_i32 = arith.constant 0 : i32
    %c0_i32_0 = arith.constant 0 : i32
    %c0_i32_1 = arith.constant 0 : i32
    %c0_i32_2 = arith.constant 0 : i32
    return %c0_i32, %c0_i32_0, %c0_i32_1 : i32, i32, i32
  }
  func.func @transform_3(%arg0: i32, %arg1: i32) -> i32 {
    %c0_i32 = arith.constant 0 : i32
    %c0_i32_0 = arith.constant 0 : i32
    return %c0_i32 : i32
  }
  func.func @transform_4(%arg0: i32, %arg1: i32) -> (i32, i32, i32) {
    %c0_i32 = arith.constant 0 : i32
    %c0_i32_0 = arith.constant 0 : i32
    %c0_i32_1 = arith.constant 0 : i32
    %c0_i32_2 = arith.constant 0 : i32
    return %c0_i32, %c0_i32_0, %c0_i32_1 : i32, i32, i32
  }
  func.func @transform_5(%arg0: i32, %arg1: i32) -> (i32, i32) {
    %c0_i32 = arith.constant 0 : i32
    %c0_i32_0 = arith.constant 0 : i32
    %c0_i32_1 = arith.constant 0 : i32
    return %c0_i32, %c0_i32_0 : i32, i32
  }
  func.func @transform_6(%arg0: i32, %arg1: i32) -> (i32, i32) {
    %c0_i32 = arith.constant 0 : i32
    %c0_i32_0 = arith.constant 0 : i32
    %c0_i32_1 = arith.constant 0 : i32
    return %c0_i32, %c0_i32_0 : i32, i32
  }
  func.func @transform_7(%arg0: i32, %arg1: i32) -> (i32, i32) {
    %c0_i32 = arith.constant 0 : i32
    %c0_i32_0 = arith.constant 0 : i32
    %c0_i32_1 = arith.constant 0 : i32
    return %c0_i32, %c0_i32_0 : i32, i32
  }
  func.func @transform_8(%arg0: i32, %arg1: i32) -> (i32, i32) {
    %c0_i32 = arith.constant 0 : i32
    %c0_i32_0 = arith.constant 0 : i32
    %c0_i32_1 = arith.constant 0 : i32
    return %c0_i32, %c0_i32_0 : i32, i32
  }
  func.func @transform_9(%arg0: i32, %arg1: i32) -> (i32, i32, i32) {
    %c0_i32 = arith.constant 0 : i32
    %c0_i32_0 = arith.constant 0 : i32
    %c0_i32_1 = arith.constant 0 : i32
    %c0_i32_2 = arith.constant 0 : i32
    return %c0_i32, %c0_i32_0, %c0_i32_1 : i32, i32, i32
  }
}

</mosaic_0001>

<bundles_post_ra>
// kernel: tpu_custom_call.1
= control target key start
LH: loop header
LB: loop body
LE: loop exit
PB: predicated region body
PF: predicated region fallthrough
CT: control target
= control target key end

     0   :  { %s2441_s0 = inlined_call_operand.hbm [shape: bf16[8,1024], index: 0, kind: input, shape index: {}]   ;;  %s2442_s1 = inlined_call_operand.hbm [shape: bf16[3,1024,128], index: 1, kind: input, shape index: {}]   ;;  %s2443_s2 = inlined_call_operand.hbm [shape: bf16[3,128,128], index: 2, kind: input, shape index: {}]   ;;  %s2444_s3 = inlined_call_operand.<no memory space> [shape: f32[1], index: 3, kind: input, shape index: {}]   ;;  %s2445_s4 = inlined_call_operand.hbm [shape: f32[3,8,128], index: 4, kind: output, shape index: {0}]   ;;  %s2446_s5 = inlined_call_operand.hbm [shape: f32[8,128], index: 5, kind: output, shape index: {1}]   ;;  %s2447_s6 = inlined_call_operand.vmem [shape: f32[8,3], index: 6, kind: output, shape index: {2}]   ;;  %s2448_s7 = inlined_call_operand.vmem [shape: s32[8,2], index: 7, kind: output, shape index: {3}]   ;;  %s2449_s8 = inlined_call_operand.vmem [shape: f32[8,2], index: 8, kind: output, shape index: {4}]   ;;  %s2450_s9 = inlined_call_operand.vmem [shape: f32[8,3,3], index: 9, kind: output, shape index: {5}]  }
   0x1   :  { %2460 = sst [smem:[#allocation25_spill]] %s2441_s0 }
   0x2   :  { %2461 = sst [smem:[#allocation26_spill]] %s2443_s2 }
   0x3   :  { %2462 = sst [smem:[#allocation27_spill]] %s2445_s4 }
   0x4   :  { %2463 = sst [smem:[#allocation28_spill]] %s2446_s5 }
   0x5   :  { %2464 = sst [smem:[#allocation29_spill]] %s2447_s6 }
   0x6   :  { %2465 = sst [smem:[#allocation30_spill]] %s2448_s7 }
   0x7   :  { %2466 = sst [smem:[#allocation31_spill]] %s2449_s8 }
   0x8   :  { %2467 = sst [smem:[#allocation32_spill]] %s2450_s9 }
   0x9   :  { %15 = sst [smem:[#allocation3]] %s2444_s3 }
   0xa   :  { %16 = vsyncpa [#allocation5], 0 }
   0xb   :  { %18 = vsyncpa [#allocation5 + $0x1], 0 }
   0xc   :  { %19 = vsyncpa [#allocation8], 0 }
   0xd   :  { %21 = vsyncpa [#allocation8 + $0x1], 0 }
   0xe   :  { %22 = vsyncpa [#allocation6], 0 }
   0xf   :  { %23 = vsyncpa [#allocation12], 0  ;;  %s2013_s11 = smov 0   ;;  %s2015_s12 = smov 0  }
  0x10   :  { %s2017_s13 = smov 0   ;;  %s2019_s14 = smov 0  }
  0x11   :  { %s2021_s15 = smov 0   ;;  %s2023_s16 = smov 0  }
  0x12   :  { %s2025_s17 = smov 0   ;;  %s2027_s3 = smov 0  }
  0x13   :  { %s2029_s18 = smov 0   ;;  %s2031_s19 = smov 0  }
  0x14   :  { %s2033_s20 = smov 0  }
  0x15 LB: > { %2468 = sst [smem:[#allocation18_spill]] %s1913_s13  ;;  %s2069_s21 = sadd.s32 4294967295, %s1945_s20   ;;  %s1945_s20 = sphi %s2033_s20, %s29_s20   ;;  %s1941_s19 = sphi %s2031_s19, %s2508_s19   ;;  %s1937_s18 = sphi %s2029_s18, %s2507_s18   ;;  %s1933_s3 = sphi %s2027_s3, %s2506_s3   ;;  %s1929_s17 = sphi %s2025_s17, %s2505_s17   ;;  %s1925_s16 = sphi %s2023_s16, %s2498_s16   ;;  %s1921_s15 = sphi %s2021_s15, %s2504_s15   ;;  %s1917_s14 = sphi %s2019_s14, %s2503_s14   ;;  %s1913_s13 = sphi %s2017_s13, %s2496_s13   ;;  %s1909_s12 = sphi %s2015_s12, %s2502_s12   ;;  %s1905_s11 = sphi %s2013_s11, %s2501_s11  }
  0x16   : > { %2469 = sst [smem:[#allocation19_spill]] %s1925_s16  ;;  %p1303_p0 = scmp.ge.s32.totalorder %s1945_s20, 1 }
  0x17   : > { %2470 = sst [smem:[#allocation20_spill]] %s1929_s17  ;;  %p62_p1 = scmp.eq.s32.totalorder %s2069_s21, 0 }
  0x18   : > { %p268_p2 = scmp.lt.s32.totalorder %s1945_s20, 7  ;;  %s2471_s2 = sld [smem:[#allocation26_spill]] }
  0x19   : > { %s1947_s26 = smov [#allocation9]   ;;  %s2451_s28 = smov 64  }
  0x1a   : > { %p2077_p3 = pnand %p1303_p0, %p268_p2  ;;  %s281_s27 = sshll.u32 %s1947_s26, 4  ;;  %s282_s27 = int_to_ptr.vmem [resolvable:$true] %s281_s27 }
  0x1b   : > { %s2452_s29 = smov 4   ;;  %s38_s30 = sadd.s32 1, %s1937_s18 }
  0x1c   : > { %p1552_p4 = pneg %p2077_p3  ;;  %p39_p6 = scmp.ge.s32.totalorder %s38_s30, 3 }
  0x1d   : > { %s41_s10 = sadd.s32 1, %s1941_s19  ;;  %s48_s22 = sadd.s32 1, %s1925_s16 }
  0x1e   : > { %s279_s24 = sshll.u32 %s2471_s2, 4  ;;  %p1553_p5 = pnand %p1552_p4, %p62_p1  ;;  %s280_s24 = int_to_ptr.hbm [resolvable:$true] %s279_s24 }
  0x1f   : > { %p55_p7 = scmp.ne.s32.totalorder %s1925_s16, %s1921_s15  ;;  %s2510_s30 = smov (%p39_p6, %s38_s30), 0 }
  0x20   : > { %1555 = dma.hbm_to_vmem [thread:$0]  (!%p1553_p5), %s280_s24, 3072, %s282_s27, [#allocation8], %s2451_s28, %s2451_s28, %s2452_s29  }
  0x21   : > { %2473 = sst [smem:[#allocation21_spill]] %s2510_s30  ;;  %s2512_s10 = smov (!%p39_p6, %s41_s10), %s1941_s19 }
  0x22   : > { %p56_p8 = scmp.eq.s32.totalorder %s1945_s20, 0  ;;  %p61_p9 = scmp.ne.s32.totalorder %s1921_s15, %s1917_s14 }
  0x23   : > { %p43_p10 = scmp.ge.s32.totalorder %s2512_s10, 2  ;;  %s71_s23 = ssub.s32 %s1937_s18, %s2510_s30 }
  0x24   : > { %p2103_p11 = por %p56_p8, %p55_p7  ;;  %p2109_p12 = por %p62_p1, %p61_p9 }
  0x25   : > { %s2514_s10 = smov (%p43_p10, %s2512_s10), 0  ;;  %s76_s14 = sadd.s32 1, %s1913_s13 }
  0x26   : > { %2476 = sst [smem:[#allocation22_spill]] %s2514_s10  ;;  %p83_p13 = scmp.ne.s32.totalorder %s1913_s13, %s1909_s12 }
  0x27   : > { %s45_s27 = ssub.s32 %s1941_s19, %s2514_s10  ;;  %p89_p0 = scmp.ne.s32.totalorder %s1909_s12, %s1905_s11 }
  0x28   : > { %p46_p2 = scmp.eq.s32.totalorder %s45_s27, 0  ;;  %s73_s28 = sor.u32 %s71_s23, %s45_s27 }
  0x29   : > { %p74_p4 = scmp.eq.s32.totalorder %s73_s28, 0  ;;  %p2124_p5 = por %p83_p13, %p56_p8 }
  0x2a   : > { %s2129_s2 = scalar_select %p46_p2, %s1925_s16, %s48_s22  }
  0x2b   : > { %s2132_s30 = scalar_select %p74_p4, %s1913_s13, %s76_s14  }
  0x2c   : > { %2478 = sst [smem:[#allocation23_spill]] %s2129_s2  ;;  %p2136_p6 = por %p89_p0, %p62_p1 }
  0x2d   : > { %2479 = sst [smem:[#allocation24_spill]] %s2132_s30  ;;  %p1564_p7 = scmp.lt.s32.totalorder %s1945_s20, 6 }
  0x2e   : > { %s298_s11 = sand.u32 1, %s1925_s16   ;;  %s1492_s28 = sshll.u32 %s1941_s19, 4 }
  0x2f   : > { %s1306_s23 = sshll.u32 %s298_s11, 4  ;;  %s2481_s0 = sld [smem:[#allocation25_spill]] }
  0x30   : > { %s302_s2 = scalar_lea.vmem [#allocation4], %s1306_s23  ;;  %p1557_p8 = pnand %p1564_p7, %p2103_p11 }
  0x31   : > { %s311_s14 = sshll.u32 %s302_s2, 4  ;;  %p2150_p9 = pnand %p1564_p7, %p2124_p5  ;;  %s312_s14 = int_to_ptr.vmem [resolvable:$true] %s311_s14 }
  0x32   : > { %s320_s16 = sand.u32 1, %s1913_s13   ;;  %s299_s7 = scalar_lea.sflag [#allocation5], %s298_s11 }
  0x33   : > { %s318_s8 = sand.u32 1, %s1945_s20   ;;  %s1309_s6 = sshll.u32 %s320_s16, 8 }
  0x34   : > { %s1310_s10 = sshll.u32 %s1941_s19, 6  ;;  %s319_s17 = scalar_lea.sflag [#allocation8], %s318_s8 }
  0x35   : > { %s307_s4 = scalar_lea.hbm %s2481_s0, %s1492_s28  ;;  %s1311_s28 = sshll.u32 %s1937_s18, 7 }
  0x36   : > { %s309_s22 = sshll.u32 %s307_s4, 4  ;;  %s322_s4 = scalar_lea.vmem [#allocation7], %s1309_s6  ;;  %s310_s22 = int_to_ptr.hbm [resolvable:$true] %s309_s22 }
  0x37   : > { %1559 = dma.hbm_to_vmem [thread:$0]  (!%p1557_p8), %s310_s22, 256, %s312_s14, %s299_s7  }
  0x38   : > { %s332_s23 = sshll.u32 %s322_s4, 4  ;;  %s327_s2 = sadd.s32 %s1311_s28, %s1310_s10  ;;  %s333_s23 = int_to_ptr.vmem [resolvable:$true] %s332_s23 }
  0x39   : > { %s1312_s27 = sshll.u32 %s327_s2, 2  ;;  %s2483_s13 = smov 4  }
  0x3a   : > { %s329_s29 = scalar_lea.hbm %s2442_s1, %s1312_s27  ;;  %s2484_s11 = smov 64  }
  0x3b   : > { %s330_s9 = sshll.u32 %s329_s29, 4  ;;  %344 = sbr.rel (%p2077_p3) target bundleno = 1969 (0x7b1), region = 36  ;;  %s331_s9 = int_to_ptr.hbm [resolvable:$true] %s330_s9 }
  0x3c   : > { %1562 = dma.hbm_to_vmem [thread:$0]  (!%p2150_p9), %s331_s9, 4096, %s333_s23, %s319_s17, %s2484_s11, %s2484_s11, %s2483_s13  }
  0x3d   : > { %s346_s6 = sand.u32 (!%p2077_p3), 1, %s1921_s15  }
  0x3e   : > { %s2169_s7 = sshll.u32 (!%p2077_p3), %s346_s6, 4  ;;  %s347_s0 = scalar_lea.sflag (!%p2077_p3), [#allocation5], %s346_s6 }
  0x3f   : > { %s350_s16 = scalar_lea.vmem (!%p2077_p3), [#allocation4], %s2169_s7 }
  0x40   : > { %1884 = dma.done.wait (%p2109_p12), %s347_s0, 256  }
  0x41   : > { %1886 = vsyncadd (%p2109_p12), %s347_s0, 4294967040  ;;  %s356_s8 = sand.u32 1, %s2069_s21   ;;  %s358_s9 = sand.u32 1, %s1909_s12  }
  0x42   : > { %s1315_s13 = sshll.u32 %s358_s9, 8  ;;  %s357_s17 = scalar_lea.sflag [#allocation8], %s356_s8 }
  0x43   : > { %s2178_s25 = scalar_lea.vmem [#allocation7], %s1315_s13 }
  0x44   : > { %1888 = dma.done.wait (%p2136_p6), %s357_s17, 4096  }
  0x45   : > { %1890 = vsyncadd (%p2136_p6), %s357_s17, 4294963200 }
  0x46   : > { %1892 = dma.done.wait (%p62_p1), [#allocation8], 3072  }
  0x47   : > { %1894 = vsyncadd (%p62_p1), [#allocation8], 4294964224  ;;  %p1317_p3 = scmp.ne.s32.totalorder %s1933_s3, 0 }
  0x48   : > { %s2485_s30 = sld [smem:[#allocation20_spill]] (!%p1317_p3) }
  0x49   : > { %406 = sbr.rel (%p1317_p3) target bundleno = 81 (0x51), region = 52 }
  0x4e   : > { %s1318_s26 = sshll.u32 %s2485_s30, 3  ;;  %v1950_v0 = vmov 0.0  }
  0x4f   : > { %s408_s22 = scalar_lea.vmem [#allocation2], %s1318_s26 }
  0x50   : > { %409 = vst [vmem:[%s408_s22] sm:$0xff] %v1950_v0 }
  0x51 PF: > { %v1500_v1 = vld [vmem:[%s2178_s25 + $0x38] sm:$0xff]  ;;  %v1499_v5 = vld [vmem:[%s2178_s25 + $0x30] sm:$0xff]  ;;  %v1498_v9 = vld [vmem:[%s2178_s25 + $0x28] sm:$0xff]  ;;  %s2486_s5 = sld [smem:[#allocation20_spill]]  ;;  %p1448_p1 = scmp.ne.s32.totalorder %s1933_s3, 1 }
  0x52   : > { %v1508_v2 = vld [vmem:[%s2178_s25 + $0x78] sm:$0xff]  ;;  %685 = vmatpush.bf16.msra.mxu0 %v1500_v1  ;;  %v1507_v6 = vld [vmem:[%s2178_s25 + $0x70] sm:$0xff]  ;;  %v1506_v10 = vld [vmem:[%s2178_s25 + $0x68] sm:$0xff]  ;;  %s2487_s28 = sld [smem:[#allocation20_spill]] (!%p1448_p1) }
  0x53   : > { %v1516_v3 = vld [vmem:[%s2178_s25 + $0xb8] sm:$0xff]  ;;  %698 = vmatpush.bf16.msra.mxu1 %v1508_v2  ;;  %v1515_v7 = vld [vmem:[%s2178_s25 + $0xb0] sm:$0xff]  ;;  %v1514_v11 = vld [vmem:[%s2178_s25 + $0xa8] sm:$0xff] }
  0x54   : > { %v1524_v4 = vld [vmem:[%s2178_s25 + $0xf8] sm:$0xff]  ;;  %711 = vmatpush.bf16.msra.mxu2 %v1516_v3  ;;  %v1523_v8 = vld [vmem:[%s2178_s25 + $0xf0] sm:$0xff]  ;;  %v1522_v12 = vld [vmem:[%s2178_s25 + $0xe8] sm:$0xff] }
  0x55   : > { %724 = vmatpush.bf16.msra.mxu3 %v1524_v4  ;;  %v1497_v13 = vld [vmem:[%s2178_s25 + $0x20] sm:$0xff]  ;;  %v1496_v17 = vld [vmem:[%s2178_s25 + $0x18] sm:$0xff]  ;;  %v1495_v21 = vld [vmem:[%s2178_s25 + $0x10] sm:$0xff] }
  0x56   : > { %686 = vmatpush.bf16.msra.mxu0 %v1499_v5  ;;  %v1505_v14 = vld [vmem:[%s2178_s25 + $0x60] sm:$0xff]  ;;  %v1504_v18 = vld [vmem:[%s2178_s25 + $0x58] sm:$0xff]  ;;  %v1503_v22 = vld [vmem:[%s2178_s25 + $0x50] sm:$0xff] }
  0x57   : > { %699 = vmatpush.bf16.msra.mxu1 %v1507_v6  ;;  %v1513_v15 = vld [vmem:[%s2178_s25 + $0xa0] sm:$0xff]  ;;  %v1512_v19 = vld [vmem:[%s2178_s25 + $0x98] sm:$0xff]  ;;  %v1511_v23 = vld [vmem:[%s2178_s25 + $0x90] sm:$0xff]  ;;  %s1319_s14 = sshll.u32 %s2486_s5, 3 }
  0x58   : > { %712 = vmatpush.bf16.msra.mxu2 %v1515_v7  ;;  %v1521_v16 = vld [vmem:[%s2178_s25 + $0xe0] sm:$0xff]  ;;  %v1520_v20 = vld [vmem:[%s2178_s25 + $0xd8] sm:$0xff]  ;;  %v1519_v24 = vld [vmem:[%s2178_s25 + $0xd0] sm:$0xff]  ;;  %s411_s10 = scalar_lea.vmem [#allocation2], %s1319_s14  ;;  %s1525_s4 = sshll.u32 (!%p1448_p1), %s2487_s28, 6 }
  0x59   : > { %725 = vmatpush.bf16.msra.mxu3 %v1523_v8  ;;  %v1494_v25 = vld [vmem:[%s2178_s25 + $0x8] sm:$0xff]  ;;  %v413_v27 = vld [vmem:[%s350_s16] sm:$0xff]  ;;  %s747_s23 = scalar_lea.vmem (!%p1448_p1), [#allocation9], %s1525_s4  ;;  %s840_s3 = scalar_lea.vmem (!%p1448_p1), [#allocation10], %s1319_s14 }
  0x5a   : > { %687 = vmatpush.bf16.msra.mxu0 %v1498_v9  ;;  %v1502_v26 = vld [vmem:[%s2178_s25 + $0x48] sm:$0xff]  ;;  %v481_v31 = vunpack.c.l.b16 %v413_v27  ;;  %v482_v32 = vunpack.c.h.b16 %v413_v27  ;;  %v1493_v33 = vld [vmem:[%s2178_s25] sm:$0xff]  ;;  %p1483_p10 = scmp.ne.s32.totalorder (!%p1448_p1), %s2487_s28, 2 }
  0x5b   : > { %700 = vmatpush.bf16.msra.mxu1 %v1506_v10  ;;  %v1510_v28 = vld [vmem:[%s2178_s25 + $0x88] sm:$0xff]  ;;  %v1501_v34 = vld [vmem:[%s2178_s25 + $0x40] sm:$0xff] }
  0x5c   : > { %713 = vmatpush.bf16.msra.mxu2 %v1514_v11  ;;  %v1518_v29 = vld [vmem:[%s2178_s25 + $0xc8] sm:$0xff]  ;;  %v1509_v37 = vld [vmem:[%s2178_s25 + $0x80] sm:$0xff]  ;;  %v485_v39 = vpack.c.b16 %v481_v31, %v481_v31  ;;  %v486_v40 = vpack.c.b16 %v482_v32, %v482_v32 }
  0x5d   : > { %726 = vmatpush.bf16.msra.mxu3 %v1522_v12  ;;  %v414_v30 = vld [vmem:[%s350_s16 + $0x8] sm:$0xff]  ;;  %v1517_v38 = vld [vmem:[%s2178_s25 + $0xc0] sm:$0xff] }
  0x5e   : > { %688 = vmatpush.bf16.msra.mxu0 %v1497_v13  ;;  %v483_v35 = vunpack.c.l.b16 %v414_v30  ;;  %v484_v36 = vunpack.c.h.b16 %v414_v30  ;;  %v412_v51 = vld [vmem:[%s411_s10] sm:$0xff] }
  0x5f   : > { %701 = vmatpush.bf16.msra.mxu1 %v1505_v14 }
  0x60   : > { %714 = vmatpush.bf16.msra.mxu2 %v1513_v15  ;;  %v487_v41 = vpack.c.b16 %v483_v35, %v483_v35  ;;  %v488_v42 = vpack.c.b16 %v484_v36, %v484_v36 }
  0x61   : > { %727 = vmatpush.bf16.msra.mxu3 %v1521_v16 }
  0x62   : > { %689 = vmatpush.bf16.msra.mxu0 %v1496_v17 }
  0x63   : > { %702 = vmatpush.bf16.msra.mxu1 %v1504_v18 }
  0x64   : > { %715 = vmatpush.bf16.msra.mxu2 %v1512_v19 }
  0x65   : > { %728 = vmatpush.bf16.msra.mxu3 %v1520_v20 }
  0x66   : > { %690 = vmatpush.bf16.msra.mxu0 %v1495_v21 }
  0x67   : > { %703 = vmatpush.bf16.msra.mxu1 %v1503_v22 }
  0x68   : > { %716 = vmatpush.bf16.msra.mxu2 %v1511_v23 }
  0x69   : > { %729 = vmatpush.bf16.msra.mxu3 %v1519_v24 }
  0x6a   : > { %691 = vmatpush.bf16.msra.mxu0 %v1494_v25 }
  0x6b   : > { %704 = vmatpush.bf16.msra.mxu1 %v1502_v26 }
  0x6c   : > { %717 = vmatpush.bf16.msra.mxu2 %v1510_v28 }
  0x6d   : > { %730 = vmatpush.bf16.msra.mxu3 %v1518_v29 }
  0x6e   : > { %692 = vmatpush.bf16.msra.mxu0 %v1493_v33 }
  0x6f   : > { %705 = vmatpush.bf16.msra.mxu1 %v1501_v34 }
  0x70   : > { %718 = vmatpush.bf16.msra.mxu2 %v1509_v37 }
  0x71   : > { %731 = vmatpush.bf16.msra.mxu3 %v1517_v38  ;;  %693 = vmatmul.bf16.vlgmr.msra.gmra.mxu0 %v485_v39 }
  0x72   : > { %706 = vmatmul.bf16.vlgmr.msra.gmra.mxu1 %v486_v40 }
  0x73   : > { %719 = vmatmul.bf16.vlgmr.msra.gmra.mxu2 %v487_v41 }
  0x74   : > { %732 = vmatmul.bf16.vlgmr.msra.gmra.mxu3 %v488_v42 }
  0xee   : > { %v694_v43 = vpop.f32.mrf.mxu0 }
  0xef   : > { %v707_v44 = vpop.f32.mrf.mxu1 }
  0xf0   : > { %v708_v45 = vadd.f32 %v707_v44, %v694_v43 }
  0xf6   : > { %v720_v46 = vpop.f32.mrf.mxu2  ;;  %v696_v49 = vpop.f32.mrf.mxu0 }
  0xf7   : > { %v733_v47 = vpop.f32.mrf.mxu3  ;;  %v721_v48 = vadd.f32 %v720_v46, %v708_v45  ;;  %v709_v50 = vpop.f32.mrf.mxu1 }
  0xf9   : > { %v734_v52 = vadd.f32 %v733_v47, %v721_v48 }
  0xfb   : > { %v737_v53 = vadd.f32 %v734_v52, %v412_v51  ;;  %742 = sbr.rel (%p1448_p1) target bundleno = 1954 (0x7a2), region = 56 }
  0xfd   : > { %738 = vst [vmem:[%s411_s10] sm:$0xff] %v737_v53 }
  0xfe   : > { %v722_v54 = vpop.f32.mrf.mxu2 }
  0xff   : > { %v735_v55 = vpop.f32.mrf.mxu3 }
 0x100   : > { %v1533_v56 = vld [vmem:[%s747_s23 + $0x38] sm:$0xff]  ;;  %v1532_v57 = vld [vmem:[%s747_s23 + $0x30] sm:$0xff]  ;;  %v1531_v58 = vld [vmem:[%s747_s23 + $0x28] sm:$0xff]  ;;  %s849_s2 = sld [smem:[#allocation3]] (!%p1483_p10) }
 0x101   : > { %812 = vmatpush.bf16.msra.mxu0 %v1533_v56  ;;  %v1530_v59 = vld [vmem:[%s747_s23 + $0x20] sm:$0xff]  ;;  %v1529_v60 = vld [vmem:[%s747_s23 + $0x18] sm:$0xff]  ;;  %v1528_v61 = vld [vmem:[%s747_s23 + $0x10] sm:$0xff]  ;;  %s2488_s11 = sld [smem:[#allocation32_spill]] (!%p1483_p10) }
 0x102   : > { %v1527_v62 = vld [vmem:[%s747_s23 + $0x8] sm:$0xff]  ;;  %v1526_v63 = vld [vmem:[%s747_s23] sm:$0xff]  ;;  %s2490_s16 = sld [smem:[#allocation29_spill]] (!%p1483_p10) }
 0x103   : > { %s2491_s13 = sld [smem:[#allocation31_spill]] (!%p1483_p10) }
 0x104   : > { %v743_v0 = vld [vmem:[%s411_s10] sm:$0xff]  ;;  %s2492_s30 = sld [smem:[#allocation30_spill]] (!%p1483_p10) }
 0x105   : > { %813 = vmatpush.bf16.msra.mxu0 %v1532_v57  ;;  %v744_v1 = vpack.c.bf16 %v743_v0, %v743_v0 }
 0x107   : > { %s2489_s6 = smov (!%p1483_p10), %s2488_s11 }
 0x109   : > { %814 = vmatpush.bf16.msra.mxu0 %v1531_v58 }
 0x10d   : > { %815 = vmatpush.bf16.msra.mxu0 %v1530_v59 }
 0x111   : > { %816 = vmatpush.bf16.msra.mxu0 %v1529_v60 }
 0x115   : > { %817 = vmatpush.bf16.msra.mxu0 %v1528_v61 }
 0x119   : > { %818 = vmatpush.bf16.msra.mxu0 %v1527_v62 }
 0x11d   : > { %819 = vmatpush.bf16.msra.mxu0 %v1526_v63 }
 0x120   : > { %820 = vmatmul.bf16.vlgmr.msra.gmra.mxu0 %v744_v1 }
 0x19d   : > { %v821_v2 = vpop.f32.mrf.mxu0 }
 0x19e   : > { %v825_v3 = vmul.f32 %v821_v2, %v821_v2 }
 0x1a0   : > { %826 = vadd.xlane.f32.xlu0 %v825_v3 }
 0x1a5   : > { %v823_v4 = vpop.f32.mrf.mxu0 }
 0x213   : > { %v827_v5 = vpop.xlane.xlu0 %826 }
 0x214   : > { %v828_v6 = vmax.f32 %v827_v5, 1e-24 }
 0x216   : > { %1671 = vrsqrt.f32 %v828_v6  ;;  %vm835_vm1 = vweird.f32 %v828_v6 }
 0x21c   : > { %v1672_v7 = vpop.eup %1671 }
 0x21d   : > { %v830_v8 = vmul.f32 %v1672_v7, %v828_v6  ;;  %vm836_vm0 = vweird.f32 %v1672_v7 }
 0x21e   : > { %vm837_vm2 = vmor %vm835_vm1, %vm836_vm0 }
 0x21f   : > { %v831_v9 = vmul.f32 %v1672_v7, %v830_v8 }
 0x221   : > { %v832_v10 = vmul.f32 0.5, %v831_v9 }
 0x223   : > { %v833_v11 = vsub.f32 1.5, %v832_v10 }
 0x225   : > { %v834_v12 = vmul.f32 %v1672_v7, %v833_v11 }
 0x226   : > { %845 = sbr.rel (%p1483_p10) target bundleno = 1954 (0x7a2), region = 60 }
 0x227   : > { %v838_v13 = vsel %vm837_vm2, %v1672_v7, %v834_v12 }
 0x228   : > { %v839_v14 = vmul.f32 %v838_v13, %v821_v2 }
 0x22a   : > { %841 = vst [vmem:[%s840_s3] sm:$0xff] %v839_v14 }
 0x22b   : > { %v850_v21 = vstv %s849_s2  ;;  %vm875_vm7 = vcmask 7168   ;;  %vm877_vm8 = vcmask 15360   ;;  %vm896_vm9 = vcmask 16384  }
 0x22c   : > { %1681 = vrcp.f32 %v850_v21  ;;  %v862_v27 = vand.u32 2147483648, %v850_v21  ;;  %vm856_vm3 = vweird.f32 %v850_v21  ;;  %v860_v29 = vand.u32 2147483647, %v850_v21 }
 0x22d   : > { %vm905_vm10 = vcmask 23552   ;;  %v1951_v11 = vmov 3.0  }
 0x22e   : > { %v863_v31 = vor.u32 1.1754944e-38, %v862_v27  ;;  %vm861_vm6 = vcmp.eq.f32.partialorder %v860_v29, 8.507059e+37  ;;  %1683 = vrcp.f32 %v1951_v11 }
 0x231   : > { %v2234_v15 = vld [vmem:[#allocation10 + $0x8] sm:$0xff]  ;;  %v2236_v16 = vld [vmem:[#allocation10] sm:$0xff]  ;;  %v2238_v17 = vld [vmem:[#allocation10 + $0x10] sm:$0xff] }
 0x232   : > { %v917_v18 = vmul.f32 %v2234_v15, %v2234_v15  ;;  %v866_v19 = vmul.f32 %v2236_v16, %v2236_v16  ;;  %v920_v20 = vmul.f32 %v2238_v17, %v2234_v15  ;;  %v872_v22 = vmul.f32 %v2238_v17, %v2236_v16  ;;  %v1682_v25 = vpop.eup %1681 }
 0x233   : > { %v869_v23 = vmul.f32 %v2234_v15, %v2236_v16  ;;  %v953_v24 = vmul.f32 %v2238_v17, %v2238_v17  ;;  %v852_v26 = vmul.f32 %v1682_v25, %v850_v21  ;;  %vm857_vm4 = vweird.f32 %v1682_v25 }
 0x234   : > { %918 = vadd.xlane.f32.xlu1 %v917_v18  ;;  %867 = vadd.xlane.f32.xlu0 %v866_v19  ;;  %vm858_vm5 = vmor %vm856_vm3, %vm857_vm4  ;;  %v1684_v12 = vpop.eup %1683 }
 0x235   : > { %921 = vadd.xlane.f32.xlu2 %v920_v20  ;;  %v853_v28 = vsub.f32 1.0, %v852_v26  ;;  %v910_v13 = vmul.f32 3.0, %v1684_v12  ;;  %vm914_vm11 = vweird.f32 %v1684_v12 }
 0x237   : > { %v854_v30 = vmul.f32 %v1682_v25, %v853_v28  ;;  %v911_v14 = vsub.f32 1.0, %v910_v13 }
 0x239   : > { %v855_v32 = vadd.f32 %v1682_v25, %v854_v30  ;;  %v912_v18 = vmul.f32 %v1684_v12, %v911_v14 }
 0x23b   : > { %v859_v33 = vsel %vm858_vm5, %v1682_v25, %v855_v32  ;;  %v913_v19 = vadd.f32 %v1684_v12, %v912_v18 }
 0x23c   : > { %873 = vadd.xlane.f32.xlu1 %v872_v22  ;;  %870 = vadd.xlane.f32.xlu0 %v869_v23  ;;  %v864_v34 = vsel %vm861_vm6, %v863_v31, %v859_v33 }
 0x23d   : > { %954 = vadd.xlane.f32.xlu2 %v953_v24  ;;  %1534 = vpush %v864_v34  ;;  %v915_v20 = vsel %vm914_vm11, %v1684_v12, %v913_v19 }
 0x26e   : > { %s1535_s27 = spop %1534 }
 0x26f   : > { %v879_v40 = vstv %s1535_s27 }
 0x2a7   : > { %v919_v35 = vpop.xlane.xlu1 %918  ;;  %v868_v36 = vpop.xlane.xlu0 %867 }
 0x2a8   : > { %v922_v37 = vpop.xlane.xlu2 %921 }
 0x2af   : > { %v874_v38 = vpop.xlane.xlu1 %873  ;;  %v871_v39 = vpop.xlane.xlu0 %870 }
 0x2b0   : > { %v956_v41 = vsel %vm875_vm7, %v874_v38, %v922_v37  ;;  %v876_v42 = vsel %vm875_vm7, %v868_v36, %v871_v39  ;;  %v923_v43 = vsel %vm875_vm7, %v871_v39, %v919_v35  ;;  %v955_v44 = vpop.xlane.xlu2 %954 }
 0x2b1   : > { %v878_v45 = vsel %vm877_vm8, %v876_v42, %v874_v38  ;;  %v924_v46 = vsel %vm877_vm8, %v923_v43, %v922_v37  ;;  %v957_v49 = vsel %vm877_vm8, %v956_v41, %v955_v44 }
 0x2b2   : > { %v880_v47 = vmul.f32 %v879_v40, %v878_v45  ;;  %v925_v48 = vmul.f32 %v924_v46, %v879_v40  ;;  %v958_v54 = vmul.f32 %v957_v49, %v879_v40 }
 0x2b4   : > { %v882_v50 = vrot.slane %v880_v47, 1  ;;  %v883_v51 = vrot.slane %v880_v47, 2  ;;  %v884_v52 = vrot.slane %v880_v47, 3  ;;  %897 = vst.msk [vmem:[%s2488_s11] sm:$0x1] %vm896_vm9, %v880_v47  ;;  %v885_v53 = vrot.slane %v880_v47, 4 }
 0x2b5   : > { %941 = vst.msk [vmem:[%s2489_s6 + $0x1] sm:$0x1] %vm896_vm9, %v925_v48  ;;  %v886_v55 = vrot.slane %v880_v47, 5  ;;  %v887_v56 = vrot.slane %v880_v47, 6  ;;  %v888_v57 = vrot.slane %v880_v47, 7  ;;  %v927_v58 = vrot.slane %v925_v48, 1 }
 0x2b6   : > { %898 = vst.msk [vmem:[%s2489_s6 + $0x4] sm:$0x1] %vm896_vm9, %v882_v50  ;;  %v982_v59 = vsel %vm905_vm10, %v958_v54, 0.0  ;;  %v949_v60 = vsel %vm905_vm10, %v925_v48, 0.0  ;;  %v906_v61 = vsel %vm905_vm10, %v880_v47, 0.0  ;;  %v928_v62 = vrot.slane %v925_v48, 2 }
 0x2b7   : > { %899 = vst.msk [vmem:[%s2489_s6 + $0x8] sm:$0x1] %vm896_vm9, %v883_v51  ;;  %983 = vadd.xlane.f32.xlu2 %v982_v59  ;;  %950 = vadd.xlane.f32.xlu1 %v949_v60  ;;  %v929_v63 = vrot.slane %v925_v48, 3  ;;  %v930_v0 = vrot.slane %v925_v48, 4  ;;  %v931_v1 = vrot.slane %v925_v48, 5  ;;  %v932_v2 = vrot.slane %v925_v48, 6 }
 0x2b8   : > { %900 = vst.msk [vmem:[%s2489_s6 + $0xc] sm:$0x1] %vm896_vm9, %v884_v52  ;;  %907 = vadd.xlane.f32.xlu0 %v906_v61  ;;  %v933_v3 = vrot.slane %v925_v48, 7  ;;  %v960_v4 = vrot.slane %v958_v54, 1  ;;  %v961_v5 = vrot.slane %v958_v54, 2  ;;  %v962_v6 = vrot.slane %v958_v54, 3 }
 0x2b9   : > { %901 = vst.msk [vmem:[%s2489_s6 + $0x10] sm:$0x1] %vm896_vm9, %v885_v53  ;;  %v963_v7 = vrot.slane %v958_v54, 4  ;;  %v964_v8 = vrot.slane %v958_v54, 5  ;;  %v965_v9 = vrot.slane %v958_v54, 6  ;;  %v966_v10 = vrot.slane %v958_v54, 7 }
 0x2ba   : > { %902 = vst.msk [vmem:[%s2489_s6 + $0x14] sm:$0x1] %vm896_vm9, %v886_v55 }
 0x2bb   : > { %903 = vst.msk [vmem:[%s2489_s6 + $0x18] sm:$0x1] %vm896_vm9, %v887_v56 }
 0x2bc   : > { %904 = vst.msk [vmem:[%s2489_s6 + $0x1c] sm:$0x1] %vm896_vm9, %v888_v57 }
 0x2bd   : > { %942 = vst.msk [vmem:[%s2489_s6 + $0x5] sm:$0x1] %vm896_vm9, %v927_v58  ;;  %v1027_v58 = vlaneseq }
 0x2be   : > { %943 = vst.msk [vmem:[%s2489_s6 + $0x9] sm:$0x1] %vm896_vm9, %v928_v62 }
 0x2bf   : > { %944 = vst.msk [vmem:[%s2489_s6 + $0xd] sm:$0x1] %vm896_vm9, %v929_v63  ;;  %v2365_v59 = vand.u32 127, %v1027_v58 }
 0x2c0   : > { %945 = vst.msk [vmem:[%s2489_s6 + $0x11] sm:$0x1] %vm896_vm9, %v930_v0 }
 0x2c1   : > { %946 = vst.msk [vmem:[%s2489_s6 + $0x15] sm:$0x1] %vm896_vm9, %v931_v1 }
 0x2c2   : > { %947 = vst.msk [vmem:[%s2489_s6 + $0x19] sm:$0x1] %vm896_vm9, %v932_v2 }
 0x2c3   : > { %948 = vst.msk [vmem:[%s2489_s6 + $0x1d] sm:$0x1] %vm896_vm9, %v933_v3 }
 0x2c4   : > { %974 = vst.msk [vmem:[%s2489_s6 + $0x2] sm:$0x1] %vm896_vm9, %v958_v54 }
 0x2c5   : > { %975 = vst.msk [vmem:[%s2489_s6 + $0x6] sm:$0x1] %vm896_vm9, %v960_v4 }
 0x2c6   : > { %976 = vst.msk [vmem:[%s2489_s6 + $0xa] sm:$0x1] %vm896_vm9, %v961_v5 }
 0x2c7   : > { %977 = vst.msk [vmem:[%s2489_s6 + $0xe] sm:$0x1] %vm896_vm9, %v962_v6 }
 0x2c8   : > { %978 = vst.msk [vmem:[%s2489_s6 + $0x12] sm:$0x1] %vm896_vm9, %v963_v7 }
 0x2c9   : > { %979 = vst.msk [vmem:[%s2489_s6 + $0x16] sm:$0x1] %vm896_vm9, %v964_v8 }
 0x2ca   : > { %980 = vst.msk [vmem:[%s2489_s6 + $0x1a] sm:$0x1] %vm896_vm9, %v965_v9 }
 0x2cb   : > { %981 = vst.msk [vmem:[%s2489_s6 + $0x1e] sm:$0x1] %vm896_vm9, %v966_v10 }
 0x32a   : > { %v984_v21 = vpop.xlane.xlu2 %983  ;;  %v951_v22 = vpop.xlane.xlu1 %950 }
 0x32b   : > { %v985_v23 = vmul.f32 %v984_v21, %v915_v20  ;;  %v952_v24 = vmul.f32 %v951_v22, %v915_v20  ;;  %v908_v25 = vpop.xlane.xlu0 %907  ;;  %v1952_v22 = vmov 0  }
 0x32c   : > { %v916_v26 = vmul.f32 %v915_v20, %v908_v25  ;;  %1675 = vset.pattern.permute.xlu1 %v1952_v22  ;;  %1673 = vset.pattern.permute.xlu2 %v1952_v22 }
 0x32e   : > { %v986_v27 = vsel %vm875_vm7, %v916_v26, %v952_v24 }
 0x32f   : > { %v987_v28 = vsel %vm877_vm8, %v986_v27, %v985_v23 }
 0x330   : > { %v988_v29 = vsub.f32 0.0, %v987_v28 }
 0x332   : > { %v989_v30 = vmul.f32 1.442695, %v988_v29 }
 0x334   : > { %1685 = vpow2.f32 %v989_v30 }
 0x33a   : > { %v1686_v31 = vpop.eup %1685 }
 0x33b   : > { %v991_v32 = vadd.f32 1.0, %v1686_v31 }
 0x33d   : > { %1687 = vrcp.f32 %v991_v32  ;;  %v1003_v36 = vand.u32 2147483648, %v991_v32  ;;  %v1001_v38 = vand.u32 2147483647, %v991_v32  ;;  %vm997_vm13 = vweird.f32 %v991_v32 }
 0x33f   : > { %v1004_v40 = vor.u32 1.1754944e-38, %v1003_v36  ;;  %vm1002_vm15 = vcmp.eq.f32.partialorder %v1001_v38, 8.507059e+37 }
 0x343   : > { %v1688_v33 = vpop.eup %1687 }
 0x344   : > { %v993_v34 = vmul.f32 %v1688_v33, %v991_v32  ;;  %vm998_vm12 = vweird.f32 %v1688_v33 }
 0x345   : > { %vm999_vm14 = vmor %vm997_vm13, %vm998_vm12 }
 0x346   : > { %v994_v35 = vsub.f32 1.0, %v993_v34 }
 0x348   : > { %v995_v37 = vmul.f32 %v1688_v33, %v994_v35 }
 0x34a   : > { %v996_v39 = vadd.f32 %v1688_v33, %v995_v37 }
 0x34c   : > { %v1000_v41 = vsel %vm999_vm14, %v1688_v33, %v996_v39  ;;  %v1953_v39 = vmov 1  }
 0x34d   : > { %v1005_v42 = vsel %vm1002_vm15, %v1004_v40, %v1000_v41  ;;  %1674 = vset.pattern.permute.xlu0 %v1953_v39 }
 0x34e   : > { %v1007_v43 = vsel %vm905_vm10, %v1005_v42, 0.0 }
 0x34f   : > { %1008 = vadd.xlane.f32.xlu0 %v1007_v43 }
 0x3c2   : > { %v1009_v44 = vpop.xlane.xlu0 %1008 }
 0x3c3   : > { %v1010_v45 = vadd.f32 1e-09, %v1009_v44 }
 0x3c5   : > { %1689 = vrcp.f32 %v1010_v45  ;;  %v1022_v49 = vand.u32 2147483648, %v1010_v45  ;;  %v1020_v51 = vand.u32 2147483647, %v1010_v45  ;;  %vm1016_vm1 = vweird.f32 %v1010_v45 }
 0x3c7   : > { %v1023_v53 = vor.u32 1.1754944e-38, %v1022_v49  ;;  %vm1021_vm3 = vcmp.eq.f32.partialorder %v1020_v51, 8.507059e+37 }
 0x3cb   : > { %v1690_v46 = vpop.eup %1689 }
 0x3cc   : > { %v1012_v47 = vmul.f32 %v1690_v46, %v1010_v45  ;;  %vm1017_vm0 = vweird.f32 %v1690_v46 }
 0x3cd   : > { %vm1018_vm2 = vmor %vm1016_vm1, %vm1017_vm0 }
 0x3ce   : > { %v1013_v48 = vsub.f32 1.0, %v1012_v47 }
 0x3d0   : > { %v1014_v50 = vmul.f32 %v1690_v46, %v1013_v48  ;;  %v1955_v48 = vmov 0.0  }
 0x3d2   : > { %v1015_v52 = vadd.f32 %v1690_v46, %v1014_v50 }
 0x3d4   : > { %v1019_v54 = vsel %vm1018_vm2, %v1690_v46, %v1015_v52  ;;  %v1954_v46 = vmov 2  }
 0x3d5   : > { %v1024_v55 = vsel %vm1021_vm3, %v1023_v53, %v1019_v54 }
 0x3d6   : > { %v1025_v56 = vmul.f32 %v1024_v55, %v1005_v42 }
 0x3d8   : > { %v1029_v57 = vsel %vm905_vm10, %v1025_v56, -inf  ;;  %1026 = vst.msk [vmem:[%s2490_s16] sm:$0xff] %vm905_vm10, %v1025_v56 }
 0x3d9   : > { %1030 = vmax.xlane.f32.xlu1 %v1029_v57 }
 0x44c   : > { %v1031_v60 = vpop.xlane.xlu1 %1030 }
 0x44d   : > { %vm1032_vm4 = vcmp.eq.f32.partialorder %v1025_v56, %v1031_v60 }
 0x44e   : > { %v1033_v61 = vsel %vm1032_vm4, %v2365_v59, 3 }
 0x44f   : > { %v1034_v62 = vsel %vm905_vm10, %v1033_v61, 2147483647 }
 0x450   : > { %v1036_v63 = vshra.s32 %v1034_v62, 16  ;;  %v1035_v1 = vand.u32 65535, %v1034_v62 }
 0x452   : > { %v1038_v0 = vcvt.s32.f32 %v1036_v63  ;;  %v1037_v3 = vcvt.s32.f32 %v1035_v1 }
 0x454   : > { %1039 = vmin.xlane.f32.xlu2 %v1038_v0 }
 0x4c7   : > { %v1040_v2 = vpop.xlane.xlu2 %1039 }
 0x4c8   : > { %vm1041_vm5 = vcmp.eq.f32.partialorder %v1038_v0, %v1040_v2  ;;  %v1046_v5 = vcvt.f32.s32 %v1040_v2 }
 0x4c9   : > { %v1042_v4 = vsel %vm1041_vm5, %v1037_v3, inf }
 0x4ca   : > { %1043 = vmin.xlane.f32.xlu0 %v1042_v4  ;;  %v1047_v7 = vshll.u32 %v1046_v5, 16 }
 0x53d   : > { %v1044_v6 = vpop.xlane.xlu0 %1043 }
 0x53e   : > { %v1045_v8 = vcvt.f32.s32 %v1044_v6 }
 0x540   : > { %v1048_v9 = vadd.s32 %v1047_v7, %v1045_v8 }
 0x542   : > { %vm1049_vm6 = vcmp.eq.s32.totalorder %v2365_v59, %v1048_v9 }
 0x543   : > { %v1050_v10 = vsel %vm1049_vm6, -1.0, %v1025_v56 }
 0x544   : > { %v1051_v11 = vsel %vm905_vm10, %v1050_v10, -inf }
 0x545   : > { %1052 = vmax.xlane.f32.xlu1 %v1051_v11 }
 0x5b8   : > { %v1053_v12 = vpop.xlane.xlu1 %1052 }
 0x5b9   : > { %vm1054_vm9 = vcmp.eq.f32.partialorder %v1050_v10, %v1053_v12  ;;  %v1071_v13 = vsel %vm875_vm7, %v1031_v60, %v1053_v12 }
 0x5ba   : > { %v1055_v14 = vsel %vm1054_vm9, %v2365_v59, 3  ;;  %v1073_v18 = vsel %vm877_vm8, %v1071_v13, 0.0 }
 0x5bb   : > { %1074 = vadd.xlane.f32.xlu0 %v1073_v18  ;;  %v1056_v19 = vsel %vm905_vm10, %v1055_v14, 2147483647 }
 0x5bc   : > { %v1058_v20 = vshra.s32 %v1056_v19, 16  ;;  %v1057_v24 = vand.u32 65535, %v1056_v19 }
 0x5be   : > { %v1060_v21 = vcvt.s32.f32 %v1058_v20  ;;  %v1059_v26 = vcvt.s32.f32 %v1057_v24 }
 0x5c0   : > { %1061 = vmin.xlane.f32.xlu2 %v1060_v21 }
 0x62e   : > { %v1075_v23 = vpop.xlane.xlu0 %1074 }
 0x62f   : > { %1691 = vrcp.f32 %v1075_v23  ;;  %v1087_v31 = vand.u32 2147483648, %v1075_v23  ;;  %v1085_v33 = vand.u32 2147483647, %v1075_v23  ;;  %vm1081_vm12 = vweird.f32 %v1075_v23 }
 0x631   : > { %v1088_v35 = vor.u32 1.1754944e-38, %v1087_v31  ;;  %vm1086_vm14 = vcmp.eq.f32.partialorder %v1085_v33, 8.507059e+37 }
 0x633   : > { %v1062_v25 = vpop.xlane.xlu2 %1061 }
 0x634   : > { %vm1063_vm11 = vcmp.eq.f32.partialorder %v1060_v21, %v1062_v25  ;;  %v1068_v40 = vcvt.f32.s32 %v1062_v25 }
 0x635   : > { %v1692_v27 = vpop.eup %1691  ;;  %v1064_v28 = vsel %vm1063_vm11, %v1059_v26, inf }
 0x636   : > { %v1077_v29 = vmul.f32 %v1692_v27, %v1075_v23  ;;  %1065 = vmin.xlane.f32.xlu1 %v1064_v28  ;;  %vm1082_vm10 = vweird.f32 %v1692_v27  ;;  %v1069_v42 = vshll.u32 %v1068_v40, 16 }
 0x637   : > { %vm1083_vm13 = vmor %vm1081_vm12, %vm1082_vm10 }
 0x638   : > { %v1078_v30 = vsub.f32 1.0, %v1077_v29 }
 0x63a   : > { %v1079_v32 = vmul.f32 %v1692_v27, %v1078_v30 }
 0x63c   : > { %v1080_v34 = vadd.f32 %v1692_v27, %v1079_v32 }
 0x63e   : > { %v1084_v36 = vsel %vm1083_vm13, %v1692_v27, %v1080_v34 }
 0x63f   : > { %v1089_v37 = vsel %vm1086_vm14, %v1088_v35, %v1084_v36 }
 0x640   : > { %v1090_v38 = vmul.f32 %v1089_v37, %v1071_v13 }
 0x642   : > { %1092 = vst.msk [vmem:[%s2491_s13] sm:$0xff] %vm877_vm8, %v1090_v38 }
 0x64f   : > { %1101 = vperm.xlu1 %1675, %v1090_v38  }
 0x657   : > { %1678 = vset.pattern.permute.xlu1 %v1953_v39 }
 0x6a9   : > { %v1066_v41 = vpop.xlane.xlu1 %1065 }
 0x6aa   : > { %v1067_v43 = vcvt.f32.s32 %v1066_v41 }
 0x6ac   : > { %v1070_v44 = vadd.s32 %v1069_v42, %v1067_v43 }
 0x6ae   : > { %v1072_v45 = vsel %vm875_vm7, %v1048_v9, %v1070_v44 }
 0x6af   : > { %1107 = vperm.xlu0 %1674, %v1072_v45   ;;  %1091 = vst.msk [vmem:[%s2492_s30] sm:$0xff] %vm877_vm8, %v1072_v45  ;;  %1094 = vperm.xlu2 %1673, %v1072_v45  }
 0x6b7   : > { %1676 = vset.pattern.permute.xlu2 %v1953_v39  ;;  %1680 = vset.pattern.permute.xlu0 %v1954_v46 }
 0x6b8   : > { %1113 = vperm.xlu2 %1676, %v1090_v38  }
 0x6c0   : > { %1677 = vset.pattern.permute.xlu2 %v1952_v22 }
 0x6c1   : > { %v1102_v51 = vpop.permute.xlu1 %1101 }
 0x709   : > { %v1095_v47 = vpop.permute.xlu2 %1094 }
 0x70a   : > { %vm1096_vm15 = vcmp.eq.s32.totalorder %v2365_v59, %v1095_v47 }
 0x70b   : > { %v1484_v49 = vsel %vm1096_vm15, 1.0, %v1955_v48 }
 0x70c   : > { %v1104_v54 = vmul.f32 %v1484_v49, %v1102_v51 }
 0x712   : > { %v1114_v52 = vpop.permute.xlu2 %1113 }
 0x721   : > { %v1108_v50 = vpop.permute.xlu0 %1107 }
 0x722   : > { %vm1109_vm7 = vcmp.eq.s32.totalorder %v2365_v59, %v1108_v50 }
 0x723   : > { %v1485_v53 = vsel %vm1109_vm7, 1.0, %v1955_v48 }
 0x724   : > { %v1116_v55 = vmul.f32 %v1485_v53, %v1114_v52 }
 0x726   : > { %v1117_v56 = vadd.f32 %v1116_v55, %v1104_v54 }
 0x728   : > { %1126 = vperm.xlu1 %1678, %v1117_v56   ;;  %1120 = vperm.xlu2 %1677, %v1117_v56  }
 0x730   : > { %1679 = vset.pattern.permute.xlu2 %v1954_v46 }
 0x731   : > { %1132 = vperm.xlu2 %1679, %v1117_v56  }
 0x782   : > { %v1121_v57 = vpop.permute.xlu2 %1120 }
 0x783   : > { %v1123_v61 = vmul.f32 %v1121_v57, %v2236_v16 }
 0x78b   : > { %v1133_v58 = vpop.permute.xlu2 %1132 }
 0x78c   : > { %v1135_v63 = vmul.f32 %v1133_v58, %v2238_v17 }
 0x79a   : > { %v1127_v60 = vpop.permute.xlu1 %1126 }
 0x79b   : > { %v1129_v62 = vmul.f32 %v1127_v60, %v2234_v15 }
 0x79d   : > { %v1130_v59 = vadd.f32 %v1129_v62, %v1123_v61 }
 0x79f   : > { %v1136_v0 = vadd.f32 %v1135_v63, %v1130_v59 }
 0x7a1   : > { %1137 = vst [vmem:[#allocation11] sm:$0xff] %v1136_v0 }
 0x7a2 PF: > { %p1566_p11 = scmp.eq.s32.totalorder %s2069_s21, 5  ;;  %s2493_s5 = sld [smem:[#allocation27_spill]] }
 0x7a3   : > { %s1956_s10 = smov [#allocation10]   ;;  %s1957_s4 = smov 128  }
 0x7a4   : > { %s1143_s28 = sshll.u32 %s1956_s10, 4  ;;  %s1958_s23 = smov 8   ;;  %s1144_s28 = int_to_ptr.vmem [resolvable:$true] %s1143_s28 }
 0x7a5   : > { %s1959_s3 = smov [#allocation11]   ;;  %s2494_s29 = sld [smem:[#allocation28_spill]] }
 0x7a6   : > { %s1158_s2 = sshll.u32 %s1959_s3, 4  ;;  %s1159_s2 = int_to_ptr.vmem [resolvable:$true] %s1158_s2 }
 0x7a8   : > { %s1145_s14 = sshll.u32 %s2493_s5, 4  ;;  %s1146_s14 = int_to_ptr.hbm [resolvable:$true] %s1145_s14 }
 0x7a9   : > { %1545 = dma.vmem_to_hbm [thread:$0]  (%p1566_p11), %s1144_s28, 384, %s1146_s14, [#allocation6], %s1957_s4, %s1957_s4, %s1958_s23  }
 0x7ab   : > { %s1160_s11 = sshll.u32 %s2494_s29, 4  ;;  %s1161_s11 = int_to_ptr.hbm [resolvable:$true] %s1160_s11 }
 0x7ac   : > { %1547 = dma.vmem_to_hbm [thread:$0]  (%p1566_p11), %s1159_s2, 128, %s1161_s11, [#allocation12]  }
 0x7ad   : > { %1896 = dma.done.wait (%p1566_p11), [#allocation6], 384  }
 0x7ae   : > { %1898 = vsyncadd (%p1566_p11), [#allocation6], 4294966912 }
 0x7af   : > { %1900 = dma.done.wait (%p1566_p11), [#allocation12], 128  }
 0x7b0   : > { %1902 = vsyncadd (%p1566_p11), [#allocation12], 4294967168 }
 0x7b1 PF: > { %s29_s20 = sadd.s32 1, %s1945_s20   ;;  %s2495_s7 = sld [smem:[#allocation18_spill]] }
 0x7b2   : > { %p26_p12 = scmp.ge.s32.totalorder %s29_s20, 8   ;;  %s2496_s13 = sld [smem:[#allocation24_spill]] }
 0x7b3   : > { %s2497_s0 = sld [smem:[#allocation19_spill]]  ;;  %s2501_s11 = smov %s1909_s12 }
 0x7b4   : > { %s2498_s16 = sld [smem:[#allocation23_spill]]  ;;  %s2503_s14 = smov %s1921_s15 }
 0x7b5   : > { %s2499_s8 = sld [smem:[#allocation21_spill]]  ;;  %s2505_s17 = smov %s1937_s18 }
 0x7b6   : > { %s2500_s9 = sld [smem:[#allocation22_spill]]  ;;  %s2506_s3 = smov %s1941_s19 }
 0x7b7   : > { %s2502_s12 = smov %s2495_s7 }
 0x7b8   :  { %28 = sbr.rel (!%p26_p12) target bundleno = 21 (0x15), region = 146 }
 0x7b9   : > { %s2504_s15 = smov %s2497_s0 }
 0x7bb   : > { %s2507_s18 = smov %s2499_s8 }
 0x7bc   : > { %s2508_s19 = smov %s2500_s9 }
 0x7bd   :  { %1203 = vsyncpa [#allocation5], 1 }
 0x7be   :  { %1205 = vsyncpa [#allocation5 + $0x1], 1 }
 0x7bf   :  { %1206 = vsyncpa [#allocation8], 1 }
 0x7c0   :  { %1208 = vsyncpa [#allocation8 + $0x1], 1 }
 0x7c1   :  { %1209 = vsyncpa [#allocation6], 1 }
 0x7c2   :  { %1211 = vsyncpa [#allocation6 + $0x1], 1 }
 0x7c3   :  { %1212 = vsyncpa [#allocation12], 1 }

</bundles_post_ra>
